<compile_context>
chip_gen: v7x
topology: tpu7x:2x2x1
jax: 0.10.0
libtpu: 0.0.40
codegen_flags: <defaults>
</compile_context>

<pallas_src>
import functools

import jax
import jax.numpy as jnp
import numpy as np
from jax.experimental import pallas as pl
from jax.experimental.pallas import tpu as pltpu

TILE_B = 8  # batch rows per grid step (sublane-aligned)


# ----------------------------------------------------------------------------
# Fused Pallas kernel: whole GLN forward, batched, one invocation
# ----------------------------------------------------------------------------
def _gln_fused_kernel(side_ref, normals_ref, w_ref, out_ref, *,
                      layers_meta, C, G, eps):
    L = len(layers_meta)
    TB = side_ref.shape[0]
    side = side_ref[...]                                        # (TB, S_pad) f32

    lo = float(np.log(eps / (1.0 - eps)))                       # logit(eps)
    hi = -lo                                                    # logit(1 - eps)

    # ---- prologue: every layer's context gating from ONE matmul -------------
    # normals_ref packs [normal_0 | ... | normal_{L-1}] column-wise with an
    # extra row equal to -offset; side has a constant 1.0 in that lane, so the
    # gate bit test reduces to "score > 0" (numerically ~identical to
    # side @ normal > offset).
    scores = jnp.dot(side, normals_ref[...],
                     preferred_element_type=jnp.float32)        # (TB, L*C)
    c_iota = jax.lax.broadcasted_iota(jnp.int32, (1, C), 1)
    powers = jnp.left_shift(jnp.int32(1), (C - 1) - c_iota).astype(jnp.float32)
    gatings = []
    for li in range(L):
        sel = jnp.where(scores[:, li * C:(li + 1) * C] > 0.0, powers, 0.0)
        gatings.append(jnp.sum(sel, axis=1, keepdims=True).astype(jnp.int32))

    # ---- layers: activation carried in LOGIT space ---------------------------
    iota_cache = {}

    def lane_iota(width):
        if width not in iota_cache:
            iota_cache[width] = jax.lax.broadcasted_iota(jnp.int32, (1, width), 1)
        return iota_cache[width]

    act = None                                                  # (TB, 128) logits
    for li, (row_off, bp, d_in) in enumerate(layers_meta):
        if li == 0:
            # logit(sigmoid(clip(side, eps, 1-eps))) == clip(side, eps, 1-eps)
            base = jnp.clip(side, eps, 1.0 - eps)               # (TB, bp) (bp==S_pad)
        else:
            # previous layer's sigmoid -> clip -> logit == clip in logit space
            base = jnp.clip(act[:, :bp], lo, hi)                # (TB, bp)
        # Lane d_in is the bias input: constant 1.0 (logit(bias) is pre-folded
        # into that weight row).  Lanes > d_in hit all-zero weight pad rows.
        inp = jnp.where(lane_iota(bp) == d_in, 1.0, base)       # (TB, bp)

        # One matmul computes every gate's output ...
        w_blk = w_ref[row_off:row_off + bp, :]                  # (bp, G*128) static
        res = jnp.dot(inp, w_blk, preferred_element_type=jnp.float32)  # (TB, G*128)

        # ... then select the active gate's 128-lane block per batch row.
        g_li = gatings[li]                                      # (TB, 1) int32
        selected = jnp.zeros((TB, 128), jnp.float32)
        for g in range(G):
            selected = selected + jnp.where(
                g_li == g, res[:, g * 128:(g + 1) * 128], 0.0)
        act = selected                                          # pre-sigmoid logits

    # Single sigmoid + clip at the very end; lane-dense (TB, 128) store.
    out_ref[...] = jnp.clip(jax.nn.sigmoid(act), eps, 1.0 - eps)


# ----------------------------------------------------------------------------
# Parameter init (deterministic, mirrors _GatedLinearLayer.__init__)
# ----------------------------------------------------------------------------
def init_gln_params(key, input_dim, output_dim, layer_dims, context_dim, eps):
    layers = []
    for prev_dim, curr_dim in zip([input_dim] + layer_dims,
                                  layer_dims + [output_dim]):
        key, k_off, k_norm, k_bias = jax.random.split(key, 4)
        offset = jax.random.normal(k_off, (context_dim,), jnp.float32)
        normal = jax.random.normal(k_norm, (input_dim, context_dim), jnp.float32)
        normal = normal / jnp.maximum(
            jnp.linalg.norm(normal, axis=1, keepdims=True), 1e-12)
        num_ctx = 2 ** context_dim
        weights = jnp.full((num_ctx, prev_dim + 1, curr_dim),
                           1.0 / (prev_dim + 1), jnp.float32)
        # torch re-samples if bias is exactly 0.5 (probability-zero event; skipped)
        bias = eps + jax.random.uniform(k_bias, (1,), jnp.float32) * (1.0 - 2.0 * eps)
        layers.append(dict(offset=offset, normal=normal, weights=weights, bias=bias))
    return layers


# ----------------------------------------------------------------------------
# One-time prepare step: all per-forward glue hoisted out of the hot path
# ----------------------------------------------------------------------------
def _round_up(x, m):
    return ((x + m - 1) // m) * m


def prepare_gln_params(layers, input_dim, eps):
    C = int(layers[0]["offset"].shape[0])
    G = 2 ** C
    L = len(layers)
    S = int(input_dim)
    S_pad = _round_up(S + 1, 8)            # side lanes 0..S-1; lane S == 1.0
    out_dim = int(layers[-1]["weights"].shape[2])

    # All gating hyperplanes in one (S_pad, L*C) operand; row S holds -offset.
    normals_aug = np.zeros((S_pad, L * C), np.float32)
    for li, layer in enumerate(layers):
        normals_aug[:S, li * C:(li + 1) * C] = np.asarray(layer["normal"], np.float32)
        normals_aug[S, li * C:(li + 1) * C] = -np.asarray(layer["offset"], np.float32)

    # One lane-dense weight slab; per layer a (block_pad, G*128) block.
    blocks, layers_meta, row_off = [], [], 0
    for layer in layers:
        w = np.asarray(layer["weights"], np.float32)            # (G, d_in+1, O)
        d_in, O = w.shape[1] - 1, w.shape[2]
        bp = _round_up(d_in + 1, 8)
        b = float(np.asarray(layer["bias"]).reshape(()))
        logit_bias = float(np.log(b) - np.log(1.0 - b))
        blk = np.zeros((bp, G * 128), np.float32)
        for g in range(G):
            blk[:d_in, g * 128:g * 128 + O] = w[g, 1:, :]
            blk[d_in, g * 128:g * 128 + O] = logit_bias * w[g, 0, :]
        blocks.append(blk)
        layers_meta.append((row_off, bp, d_in))
        row_off += bp
    assert layers_meta[0][1] == S_pad      # layer-0 input width == padded side width
    w_slab = np.concatenate(blocks, axis=0)                     # (ROWS, G*128)

    arrays = dict(normals=jnp.asarray(normals_aug), w_slab=jnp.asarray(w_slab))
    meta = (S, S_pad, C, G, out_dim, float(eps), tuple(layers_meta))
    return arrays, meta


# ----------------------------------------------------------------------------
# GLNModule.forward — one fused, batched pallas_call
# ----------------------------------------------------------------------------
@functools.partial(jax.jit, static_argnames=("meta",))
def _gln_forward_padded(side_aug, normals_aug, w_slab, *, meta):
    S, S_pad, C, G, out_dim, eps, layers_meta = meta
    Bp = side_aug.shape[0]
    L = len(layers_meta)
    rows = w_slab.shape[0]
    kernel = functools.partial(_gln_fused_kernel, layers_meta=layers_meta,
                               C=C, G=G, eps=eps)
    return pl.pallas_call(
        kernel,
        out_shape=jax.ShapeDtypeStruct((Bp, 128), jnp.float32),
        grid=(Bp // TILE_B,),
        in_specs=[
            pl.BlockSpec((TILE_B, S_pad), lambda b: (b, 0)),    # batch-tiled
            pl.BlockSpec((S_pad, L * C), lambda b: (0, 0)),     # resident params
            pl.BlockSpec((rows, G * 128), lambda b: (0, 0)),    # resident params
        ],
        out_specs=pl.BlockSpec((TILE_B, 128), lambda b: (b, 0)),
        compiler_params=pltpu.CompilerParams(
            dimension_semantics=("parallel",)),                 # 2-TC shard on v7x
    )(side_aug, normals_aug, w_slab)


def gln_forward(prepared, side_info):
    """GLNModule.forward; accepts (S,) like the torch module, or a (B, S) batch."""
    arrays, meta = prepared
    S, S_pad, C, G, out_dim, eps, layers_meta = meta
    single = side_info.ndim == 1
    side2d = jnp.asarray(side_info, jnp.float32).reshape(-1, S)
    B = side2d.shape[0]
    Bp = _round_up(max(B, 1), TILE_B)
    side_aug = jnp.zeros((Bp, S_pad), jnp.float32)
    side_aug = side_aug.at[:B, :S].set(side2d)
    side_aug = side_aug.at[:, S].set(1.0)                       # offset-fold lane
    out = _gln_forward_padded(side_aug, arrays["normals"], arrays["w_slab"],
                              meta=meta)
    out = out[:B, :out_dim]
    return out[0] if single else out


# ----------------------------------------------------------------------------
# Pure-JAX reference (mirrors the PyTorch forward) for verification
# ----------------------------------------------------------------------------
def gln_reference(layers, side_info, eps):
    side = jnp.asarray(side_info, jnp.float32)
    out = None
    for layer in layers:
        if out is None:
            inp = jnp.concatenate(
                [layer["bias"], jax.nn.sigmoid(jnp.clip(side, eps, 1.0 - eps))])
        else:
            inp = jnp.concatenate([layer["bias"], out])
        C = layer["offset"].shape[0]
        bits = (side @ layer["normal"] > layer["offset"]).astype(jnp.float32)
        powers = 2.0 ** jnp.arange(C - 1, -1, -1, dtype=jnp.float32)
        gating = (bits @ powers).astype(jnp.int32)
        w = layer["weights"][gating]
        logit = jnp.log(inp) - jnp.log(1.0 - inp)
        out = jnp.clip(jax.nn.sigmoid(logit @ w), eps, 1.0 - eps)
    return out


if __name__ == "__main__":
    key = jax.random.PRNGKey(0)
    input_dim, output_dim = 16, 4
    layer_dims = [8, 8]
    context_dim = 4
    eps = 0.001
    batch = 16

    k_params, k_side, k_perturb = jax.random.split(key, 3)
    layers = init_gln_params(k_params, input_dim, output_dim, layer_dims,
                             context_dim, eps)
    # Perturb the constant-initialized weights so the data-dependent
    # weights[gating] selection is actually exercised by the check.
    for layer in layers:
        k_perturb, k = jax.random.split(k_perturb)
        layer["weights"] = layer["weights"] + 0.01 * jax.random.normal(
            k, layer["weights"].shape, jnp.float32)

    side_batch = jax.random.normal(k_side, (batch, input_dim), jnp.float32)

    prepared = prepare_gln_params(layers, input_dim, eps)

    # Batched forward: one fused kernel call, grid over batch tiles.
    out = jax.block_until_ready(gln_forward(prepared, side_batch))
    assert out.shape == (batch, output_dim)

    ref = np.stack([np.asarray(gln_reference(layers, side_batch[b], eps))
                    for b in range(batch)])
    np.testing.assert_allclose(np.asarray(out), ref, rtol=1e-4, atol=2e-4)

    # Single-vector path (the torch module's actual forward signature).
    out1 = jax.block_until_ready(gln_forward(prepared, side_batch[0]))
    assert out1.shape == (output_dim,)
    np.testing.assert_allclose(np.asarray(out1), ref[0], rtol=1e-4, atol=2e-4)

    print("KERNEL_OK")
</pallas_src>

<mosaic_0001>
module attributes {stable_mosaic.version = 11 : i64} {
  func.func @_gln_fused_kernel(%arg0: i32, %arg1: memref<8x24xf32, #tpu.memory_space<vmem>>, %arg2: memref<24x12xf32, #tpu.memory_space<vmem>>, %arg3: memref<56x2048xf32, #tpu.memory_space<vmem>>, %arg4: memref<8x128xf32, #tpu.memory_space<vmem>>) attributes {dimension_semantics = [#tpu.dimension_semantics<parallel>], iteration_bounds = array<i64: 2>, scalar_prefetch = 0 : i64, scratch_operands = 0 : i64, tpu.core_type = #tpu.core_type<tc>, window_params = [{transform_indices = @transform_0, window_bounds = array<i64: 8, 24>}, {pipeline_mode = #tpu.pipeline_mode<synchronous>, transform_indices = @transform_1, window_bounds = array<i64: 24, 12>}, {pipeline_mode = #tpu.pipeline_mode<synchronous>, transform_indices = @transform_2, window_bounds = array<i64: 56, 2048>}, {transform_indices = @transform_3, window_bounds = array<i64: 8, 128>}]} {
    %c0 = arith.constant 0 : index
    %c0_0 = arith.constant 0 : index
    %0 = vector.load %arg1[%c0, %c0_0] : memref<8x24xf32, #tpu.memory_space<vmem>>, vector<8x24xf32>
    %c0_1 = arith.constant 0 : index
    %c0_2 = arith.constant 0 : index
    %1 = vector.load %arg2[%c0_1, %c0_2] : memref<24x12xf32, #tpu.memory_space<vmem>>, vector<24x12xf32>
    %cst = arith.constant dense<0.000000e+00> : vector<8x12xf32>
    %2 = tpu.matmul %0, %1, %cst {dimension_numbers = #tpu.dot_dimension_numbers<[1], [0], [0], [1], [0, 0, 1, 1], [], []>} : vector<8x24xf32>, vector<24x12xf32>, vector<8x12xf32> -> vector<8x12xf32>
    %3 = tpu.iota {dimensions = array<i32: 1>} : vector<1x4xi32>
    %c3_i32 = arith.constant 3 : i32
    %4 = vector.broadcast %c3_i32 : i32 to vector<1x4xi32>
    %5 = arith.subi %4, %3 : vector<1x4xi32>
    %c1_i32 = arith.constant 1 : i32
    %6 = vector.broadcast %c1_i32 : i32 to vector<1x4xi32>
    %7 = arith.shli %6, %5 : vector<1x4xi32>
    %8 = arith.sitofp %7 : vector<1x4xi32> to vector<1x4xf32>
    %9 = vector.extract_strided_slice %2 {offsets = [0, 0], sizes = [8, 4], strides = [1, 1]} : vector<8x12xf32> to vector<8x4xf32>
    %cst_3 = arith.constant 0.000000e+00 : f32
    %10 = vector.broadcast %cst_3 : f32 to vector<8x4xf32>
    %11 = arith.cmpf ogt, %9, %10 : vector<8x4xf32>
    %cst_4 = arith.constant 0.000000e+00 : f32
    %12 = vector.shape_cast %8 : vector<1x4xf32> to vector<1x4xf32>
    %13 = vector.broadcast %12 : vector<1x4xf32> to vector<8x4xf32>
    %14 = vector.broadcast %cst_4 : f32 to vector<8x4xf32>
    %15 = arith.select %11, %13, %14 : vector<8x4xi1>, vector<8x4xf32>
    %cst_5 = arith.constant dense<0.000000e+00> : vector<8xf32>
    %16 = vector.multi_reduction <add>, %15, %cst_5 [1] : vector<8x4xf32> to vector<8xf32>
    %17 = vector.shape_cast %16 : vector<8xf32> to vector<8x1xf32>
    %18 = arith.fptosi %17 : vector<8x1xf32> to vector<8x1xi32>
    %19 = vector.extract_strided_slice %2 {offsets = [0, 4], sizes = [8, 4], strides = [1, 1]} : vector<8x12xf32> to vector<8x4xf32>
    %cst_6 = arith.constant 0.000000e+00 : f32
    %20 = vector.broadcast %cst_6 : f32 to vector<8x4xf32>
    %21 = arith.cmpf ogt, %19, %20 : vector<8x4xf32>
    %cst_7 = arith.constant 0.000000e+00 : f32
    %22 = vector.shape_cast %8 : vector<1x4xf32> to vector<1x4xf32>
    %23 = vector.broadcast %22 : vector<1x4xf32> to vector<8x4xf32>
    %24 = vector.broadcast %cst_7 : f32 to vector<8x4xf32>
    %25 = arith.select %21, %23, %24 : vector<8x4xi1>, vector<8x4xf32>
    %cst_8 = arith.constant dense<0.000000e+00> : vector<8xf32>
    %26 = vector.multi_reduction <add>, %25, %cst_8 [1] : vector<8x4xf32> to vector<8xf32>
    %27 = vector.shape_cast %26 : vector<8xf32> to vector<8x1xf32>
    %28 = arith.fptosi %27 : vector<8x1xf32> to vector<8x1xi32>
    %29 = vector.extract_strided_slice %2 {offsets = [0, 8], sizes = [8, 4], strides = [1, 1]} : vector<8x12xf32> to vector<8x4xf32>
    %cst_9 = arith.constant 0.000000e+00 : f32
    %30 = vector.broadcast %cst_9 : f32 to vector<8x4xf32>
    %31 = arith.cmpf ogt, %29, %30 : vector<8x4xf32>
    %cst_10 = arith.constant 0.000000e+00 : f32
    %32 = vector.shape_cast %8 : vector<1x4xf32> to vector<1x4xf32>
    %33 = vector.broadcast %32 : vector<1x4xf32> to vector<8x4xf32>
    %34 = vector.broadcast %cst_10 : f32 to vector<8x4xf32>
    %35 = arith.select %31, %33, %34 : vector<8x4xi1>, vector<8x4xf32>
    %cst_11 = arith.constant dense<0.000000e+00> : vector<8xf32>
    %36 = vector.multi_reduction <add>, %35, %cst_11 [1] : vector<8x4xf32> to vector<8xf32>
    %37 = vector.shape_cast %36 : vector<8xf32> to vector<8x1xf32>
    %38 = arith.fptosi %37 : vector<8x1xf32> to vector<8x1xi32>
    %cst_12 = arith.constant 1.000000e-03 : f32
    %cst_13 = arith.constant 9.990000e-01 : f32
    %39 = vector.broadcast %cst_12 : f32 to vector<8x24xf32>
    %40 = arith.maximumf %39, %0 : vector<8x24xf32>
    %41 = vector.broadcast %cst_13 : f32 to vector<8x24xf32>
    %42 = arith.minimumf %41, %40 : vector<8x24xf32>
    %43 = tpu.iota {dimensions = array<i32: 1>} : vector<1x24xi32>
    %c16_i32 = arith.constant 16 : i32
    %44 = vector.broadcast %c16_i32 : i32 to vector<1x24xi32>
    %45 = arith.cmpi eq, %43, %44 : vector<1x24xi32>
    %cst_14 = arith.constant 1.000000e+00 : f32
    %46 = vector.shape_cast %45 : vector<1x24xi1> to vector<1x24xi1>
    %47 = vector.broadcast %46 : vector<1x24xi1> to vector<8x24xi1>
    %48 = vector.broadcast %cst_14 : f32 to vector<8x24xf32>
    %49 = arith.select %47, %48, %42 : vector<8x24xi1>, vector<8x24xf32>
    %c0_15 = arith.constant 0 : index
    %c0_16 = arith.constant 0 : index
    %50 = vector.load %arg3[%c0_15, %c0_16] : memref<56x2048xf32, #tpu.memory_space<vmem>>, vector<24x2048xf32>
    %cst_17 = arith.constant dense<0.000000e+00> : vector<8x2048xf32>
    %51 = tpu.matmul %49, %50, %cst_17 {dimension_numbers = #tpu.dot_dimension_numbers<[1], [0], [0], [1], [0, 0, 1, 1], [], []>} : vector<8x24xf32>, vector<24x2048xf32>, vector<8x2048xf32> -> vector<8x2048xf32>
    %cst_18 = arith.constant 0.000000e+00 : f32
    %52 = vector.broadcast %cst_18 : f32 to vector<8x128xf32>
    %c0_i32 = arith.constant 0 : i32
    %53 = vector.broadcast %c0_i32 : i32 to vector<8x1xi32>
    %54 = arith.cmpi eq, %18, %53 : vector<8x1xi32>
    %55 = vector.extract_strided_slice %51 {offsets = [0, 0], sizes = [8, 128], strides = [1, 1]} : vector<8x2048xf32> to vector<8x128xf32>
    %cst_19 = arith.constant 0.000000e+00 : f32
    %56 = vector.shape_cast %54 : vector<8x1xi1> to vector<8x1xi1>
    %57 = vector.broadcast %56 : vector<8x1xi1> to vector<8x128xi1>
    %58 = vector.broadcast %cst_19 : f32 to vector<8x128xf32>
    %59 = arith.select %57, %55, %58 : vector<8x128xi1>, vector<8x128xf32>
    %60 = arith.addf %52, %59 : vector<8x128xf32>
    %c1_i32_20 = arith.constant 1 : i32
    %61 = vector.broadcast %c1_i32_20 : i32 to vector<8x1xi32>
    %62 = arith.cmpi eq, %18, %61 : vector<8x1xi32>
    %63 = vector.extract_strided_slice %51 {offsets = [0, 128], sizes = [8, 128], strides = [1, 1]} : vector<8x2048xf32> to vector<8x128xf32>
    %cst_21 = arith.constant 0.000000e+00 : f32
    %64 = vector.shape_cast %62 : vector<8x1xi1> to vector<8x1xi1>
    %65 = vector.broadcast %64 : vector<8x1xi1> to vector<8x128xi1>
    %66 = vector.broadcast %cst_21 : f32 to vector<8x128xf32>
    %67 = arith.select %65, %63, %66 : vector<8x128xi1>, vector<8x128xf32>
    %68 = arith.addf %60, %67 : vector<8x128xf32>
    %c2_i32 = arith.constant 2 : i32
    %69 = vector.broadcast %c2_i32 : i32 to vector<8x1xi32>
    %70 = arith.cmpi eq, %18, %69 : vector<8x1xi32>
    %71 = vector.extract_strided_slice %51 {offsets = [0, 256], sizes = [8, 128], strides = [1, 1]} : vector<8x2048xf32> to vector<8x128xf32>
    %cst_22 = arith.constant 0.000000e+00 : f32
    %72 = vector.shape_cast %70 : vector<8x1xi1> to vector<8x1xi1>
    %73 = vector.broadcast %72 : vector<8x1xi1> to vector<8x128xi1>
    %74 = vector.broadcast %cst_22 : f32 to vector<8x128xf32>
    %75 = arith.select %73, %71, %74 : vector<8x128xi1>, vector<8x128xf32>
    %76 = arith.addf %68, %75 : vector<8x128xf32>
    %c3_i32_23 = arith.constant 3 : i32
    %77 = vector.broadcast %c3_i32_23 : i32 to vector<8x1xi32>
    %78 = arith.cmpi eq, %18, %77 : vector<8x1xi32>
    %79 = vector.extract_strided_slice %51 {offsets = [0, 384], sizes = [8, 128], strides = [1, 1]} : vector<8x2048xf32> to vector<8x128xf32>
    %cst_24 = arith.constant 0.000000e+00 : f32
    %80 = vector.shape_cast %78 : vector<8x1xi1> to vector<8x1xi1>
    %81 = vector.broadcast %80 : vector<8x1xi1> to vector<8x128xi1>
    %82 = vector.broadcast %cst_24 : f32 to vector<8x128xf32>
    %83 = arith.select %81, %79, %82 : vector<8x128xi1>, vector<8x128xf32>
    %84 = arith.addf %76, %83 : vector<8x128xf32>
    %c4_i32 = arith.constant 4 : i32
    %85 = vector.broadcast %c4_i32 : i32 to vector<8x1xi32>
    %86 = arith.cmpi eq, %18, %85 : vector<8x1xi32>
    %87 = vector.extract_strided_slice %51 {offsets = [0, 512], sizes = [8, 128], strides = [1, 1]} : vector<8x2048xf32> to vector<8x128xf32>
    %cst_25 = arith.constant 0.000000e+00 : f32
    %88 = vector.shape_cast %86 : vector<8x1xi1> to vector<8x1xi1>
    %89 = vector.broadcast %88 : vector<8x1xi1> to vector<8x128xi1>
    %90 = vector.broadcast %cst_25 : f32 to vector<8x128xf32>
    %91 = arith.select %89, %87, %90 : vector<8x128xi1>, vector<8x128xf32>
    %92 = arith.addf %84, %91 : vector<8x128xf32>
    %c5_i32 = arith.constant 5 : i32
    %93 = vector.broadcast %c5_i32 : i32 to vector<8x1xi32>
    %94 = arith.cmpi eq, %18, %93 : vector<8x1xi32>
    %95 = vector.extract_strided_slice %51 {offsets = [0, 640], sizes = [8, 128], strides = [1, 1]} : vector<8x2048xf32> to vector<8x128xf32>
    %cst_26 = arith.constant 0.000000e+00 : f32
    %96 = vector.shape_cast %94 : vector<8x1xi1> to vector<8x1xi1>
    %97 = vector.broadcast %96 : vector<8x1xi1> to vector<8x128xi1>
    %98 = vector.broadcast %cst_26 : f32 to vector<8x128xf32>
    %99 = arith.select %97, %95, %98 : vector<8x128xi1>, vector<8x128xf32>
    %100 = arith.addf %92, %99 : vector<8x128xf32>
    %c6_i32 = arith.constant 6 : i32
    %101 = vector.broadcast %c6_i32 : i32 to vector<8x1xi32>
    %102 = arith.cmpi eq, %18, %101 : vector<8x1xi32>
    %103 = vector.extract_strided_slice %51 {offsets = [0, 768], sizes = [8, 128], strides = [1, 1]} : vector<8x2048xf32> to vector<8x128xf32>
    %cst_27 = arith.constant 0.000000e+00 : f32
    %104 = vector.shape_cast %102 : vector<8x1xi1> to vector<8x1xi1>
    %105 = vector.broadcast %104 : vector<8x1xi1> to vector<8x128xi1>
    %106 = vector.broadcast %cst_27 : f32 to vector<8x128xf32>
    %107 = arith.select %105, %103, %106 : vector<8x128xi1>, vector<8x128xf32>
    %108 = arith.addf %100, %107 : vector<8x128xf32>
    %c7_i32 = arith.constant 7 : i32
    %109 = vector.broadcast %c7_i32 : i32 to vector<8x1xi32>
    %110 = arith.cmpi eq, %18, %109 : vector<8x1xi32>
    %111 = vector.extract_strided_slice %51 {offsets = [0, 896], sizes = [8, 128], strides = [1, 1]} : vector<8x2048xf32> to vector<8x128xf32>
    %cst_28 = arith.constant 0.000000e+00 : f32
    %112 = vector.shape_cast %110 : vector<8x1xi1> to vector<8x1xi1>
    %113 = vector.broadcast %112 : vector<8x1xi1> to vector<8x128xi1>
    %114 = vector.broadcast %cst_28 : f32 to vector<8x128xf32>
    %115 = arith.select %113, %111, %114 : vector<8x128xi1>, vector<8x128xf32>
    %116 = arith.addf %108, %115 : vector<8x128xf32>
    %c8_i32 = arith.constant 8 : i32
    %117 = vector.broadcast %c8_i32 : i32 to vector<8x1xi32>
    %118 = arith.cmpi eq, %18, %117 : vector<8x1xi32>
    %119 = vector.extract_strided_slice %51 {offsets = [0, 1024], sizes = [8, 128], strides = [1, 1]} : vector<8x2048xf32> to vector<8x128xf32>
    %cst_29 = arith.constant 0.000000e+00 : f32
    %120 = vector.shape_cast %118 : vector<8x1xi1> to vector<8x1xi1>
    %121 = vector.broadcast %120 : vector<8x1xi1> to vector<8x128xi1>
    %122 = vector.broadcast %cst_29 : f32 to vector<8x128xf32>
    %123 = arith.select %121, %119, %122 : vector<8x128xi1>, vector<8x128xf32>
    %124 = arith.addf %116, %123 : vector<8x128xf32>
    %c9_i32 = arith.constant 9 : i32
    %125 = vector.broadcast %c9_i32 : i32 to vector<8x1xi32>
    %126 = arith.cmpi eq, %18, %125 : vector<8x1xi32>
    %127 = vector.extract_strided_slice %51 {offsets = [0, 1152], sizes = [8, 128], strides = [1, 1]} : vector<8x2048xf32> to vector<8x128xf32>
    %cst_30 = arith.constant 0.000000e+00 : f32
    %128 = vector.shape_cast %126 : vector<8x1xi1> to vector<8x1xi1>
    %129 = vector.broadcast %128 : vector<8x1xi1> to vector<8x128xi1>
    %130 = vector.broadcast %cst_30 : f32 to vector<8x128xf32>
    %131 = arith.select %129, %127, %130 : vector<8x128xi1>, vector<8x128xf32>
    %132 = arith.addf %124, %131 : vector<8x128xf32>
    %c10_i32 = arith.constant 10 : i32
    %133 = vector.broadcast %c10_i32 : i32 to vector<8x1xi32>
    %134 = arith.cmpi eq, %18, %133 : vector<8x1xi32>
    %135 = vector.extract_strided_slice %51 {offsets = [0, 1280], sizes = [8, 128], strides = [1, 1]} : vector<8x2048xf32> to vector<8x128xf32>
    %cst_31 = arith.constant 0.000000e+00 : f32
    %136 = vector.shape_cast %134 : vector<8x1xi1> to vector<8x1xi1>
    %137 = vector.broadcast %136 : vector<8x1xi1> to vector<8x128xi1>
    %138 = vector.broadcast %cst_31 : f32 to vector<8x128xf32>
    %139 = arith.select %137, %135, %138 : vector<8x128xi1>, vector<8x128xf32>
    %140 = arith.addf %132, %139 : vector<8x128xf32>
    %c11_i32 = arith.constant 11 : i32
    %141 = vector.broadcast %c11_i32 : i32 to vector<8x1xi32>
    %142 = arith.cmpi eq, %18, %141 : vector<8x1xi32>
    %143 = vector.extract_strided_slice %51 {offsets = [0, 1408], sizes = [8, 128], strides = [1, 1]} : vector<8x2048xf32> to vector<8x128xf32>
    %cst_32 = arith.constant 0.000000e+00 : f32
    %144 = vector.shape_cast %142 : vector<8x1xi1> to vector<8x1xi1>
    %145 = vector.broadcast %144 : vector<8x1xi1> to vector<8x128xi1>
    %146 = vector.broadcast %cst_32 : f32 to vector<8x128xf32>
    %147 = arith.select %145, %143, %146 : vector<8x128xi1>, vector<8x128xf32>
    %148 = arith.addf %140, %147 : vector<8x128xf32>
    %c12_i32 = arith.constant 12 : i32
    %149 = vector.broadcast %c12_i32 : i32 to vector<8x1xi32>
    %150 = arith.cmpi eq, %18, %149 : vector<8x1xi32>
    %151 = vector.extract_strided_slice %51 {offsets = [0, 1536], sizes = [8, 128], strides = [1, 1]} : vector<8x2048xf32> to vector<8x128xf32>
    %cst_33 = arith.constant 0.000000e+00 : f32
    %152 = vector.shape_cast %150 : vector<8x1xi1> to vector<8x1xi1>
    %153 = vector.broadcast %152 : vector<8x1xi1> to vector<8x128xi1>
    %154 = vector.broadcast %cst_33 : f32 to vector<8x128xf32>
    %155 = arith.select %153, %151, %154 : vector<8x128xi1>, vector<8x128xf32>
    %156 = arith.addf %148, %155 : vector<8x128xf32>
    %c13_i32 = arith.constant 13 : i32
    %157 = vector.broadcast %c13_i32 : i32 to vector<8x1xi32>
    %158 = arith.cmpi eq, %18, %157 : vector<8x1xi32>
    %159 = vector.extract_strided_slice %51 {offsets = [0, 1664], sizes = [8, 128], strides = [1, 1]} : vector<8x2048xf32> to vector<8x128xf32>
    %cst_34 = arith.constant 0.000000e+00 : f32
    %160 = vector.shape_cast %158 : vector<8x1xi1> to vector<8x1xi1>
    %161 = vector.broadcast %160 : vector<8x1xi1> to vector<8x128xi1>
    %162 = vector.broadcast %cst_34 : f32 to vector<8x128xf32>
    %163 = arith.select %161, %159, %162 : vector<8x128xi1>, vector<8x128xf32>
    %164 = arith.addf %156, %163 : vector<8x128xf32>
    %c14_i32 = arith.constant 14 : i32
    %165 = vector.broadcast %c14_i32 : i32 to vector<8x1xi32>
    %166 = arith.cmpi eq, %18, %165 : vector<8x1xi32>
    %167 = vector.extract_strided_slice %51 {offsets = [0, 1792], sizes = [8, 128], strides = [1, 1]} : vector<8x2048xf32> to vector<8x128xf32>
    %cst_35 = arith.constant 0.000000e+00 : f32
    %168 = vector.shape_cast %166 : vector<8x1xi1> to vector<8x1xi1>
    %169 = vector.broadcast %168 : vector<8x1xi1> to vector<8x128xi1>
    %170 = vector.broadcast %cst_35 : f32 to vector<8x128xf32>
    %171 = arith.select %169, %167, %170 : vector<8x128xi1>, vector<8x128xf32>
    %172 = arith.addf %164, %171 : vector<8x128xf32>
    %c15_i32 = arith.constant 15 : i32
    %173 = vector.broadcast %c15_i32 : i32 to vector<8x1xi32>
    %174 = arith.cmpi eq, %18, %173 : vector<8x1xi32>
    %175 = vector.extract_strided_slice %51 {offsets = [0, 1920], sizes = [8, 128], strides = [1, 1]} : vector<8x2048xf32> to vector<8x128xf32>
    %cst_36 = arith.constant 0.000000e+00 : f32
    %176 = vector.shape_cast %174 : vector<8x1xi1> to vector<8x1xi1>
    %177 = vector.broadcast %176 : vector<8x1xi1> to vector<8x128xi1>
    %178 = vector.broadcast %cst_36 : f32 to vector<8x128xf32>
    %179 = arith.select %177, %175, %178 : vector<8x128xi1>, vector<8x128xf32>
    %180 = arith.addf %172, %179 : vector<8x128xf32>
    %181 = vector.extract_strided_slice %180 {offsets = [0, 0], sizes = [8, 16], strides = [1, 1]} : vector<8x128xf32> to vector<8x16xf32>
    %cst_37 = arith.constant -6.90675497 : f32
    %cst_38 = arith.constant 6.90675497 : f32
    %182 = vector.broadcast %cst_37 : f32 to vector<8x16xf32>
    %183 = arith.maximumf %182, %181 : vector<8x16xf32>
    %184 = vector.broadcast %cst_38 : f32 to vector<8x16xf32>
    %185 = arith.minimumf %184, %183 : vector<8x16xf32>
    %186 = tpu.iota {dimensions = array<i32: 1>} : vector<1x16xi32>
    %c8_i32_39 = arith.constant 8 : i32
    %187 = vector.broadcast %c8_i32_39 : i32 to vector<1x16xi32>
    %188 = arith.cmpi eq, %186, %187 : vector<1x16xi32>
    %cst_40 = arith.constant 1.000000e+00 : f32
    %189 = vector.shape_cast %188 : vector<1x16xi1> to vector<1x16xi1>
    %190 = vector.broadcast %189 : vector<1x16xi1> to vector<8x16xi1>
    %191 = vector.broadcast %cst_40 : f32 to vector<8x16xf32>
    %192 = arith.select %190, %191, %185 : vector<8x16xi1>, vector<8x16xf32>
    %c24 = arith.constant 24 : index
    %c0_41 = arith.constant 0 : index
    %193 = vector.load %arg3[%c24, %c0_41] : memref<56x2048xf32, #tpu.memory_space<vmem>>, vector<16x2048xf32>
    %cst_42 = arith.constant dense<0.000000e+00> : vector<8x2048xf32>
    %194 = tpu.matmul %192, %193, %cst_42 {dimension_numbers = #tpu.dot_dimension_numbers<[1], [0], [0], [1], [0, 0, 1, 1], [], []>} : vector<8x16xf32>, vector<16x2048xf32>, vector<8x2048xf32> -> vector<8x2048xf32>
    %cst_43 = arith.constant 0.000000e+00 : f32
    %195 = vector.broadcast %cst_43 : f32 to vector<8x128xf32>
    %c0_i32_44 = arith.constant 0 : i32
    %196 = vector.broadcast %c0_i32_44 : i32 to vector<8x1xi32>
    %197 = arith.cmpi eq, %28, %196 : vector<8x1xi32>
    %198 = vector.extract_strided_slice %194 {offsets = [0, 0], sizes = [8, 128], strides = [1, 1]} : vector<8x2048xf32> to vector<8x128xf32>
    %cst_45 = arith.constant 0.000000e+00 : f32
    %199 = vector.shape_cast %197 : vector<8x1xi1> to vector<8x1xi1>
    %200 = vector.broadcast %199 : vector<8x1xi1> to vector<8x128xi1>
    %201 = vector.broadcast %cst_45 : f32 to vector<8x128xf32>
    %202 = arith.select %200, %198, %201 : vector<8x128xi1>, vector<8x128xf32>
    %203 = arith.addf %195, %202 : vector<8x128xf32>
    %c1_i32_46 = arith.constant 1 : i32
    %204 = vector.broadcast %c1_i32_46 : i32 to vector<8x1xi32>
    %205 = arith.cmpi eq, %28, %204 : vector<8x1xi32>
    %206 = vector.extract_strided_slice %194 {offsets = [0, 128], sizes = [8, 128], strides = [1, 1]} : vector<8x2048xf32> to vector<8x128xf32>
    %cst_47 = arith.constant 0.000000e+00 : f32
    %207 = vector.shape_cast %205 : vector<8x1xi1> to vector<8x1xi1>
    %208 = vector.broadcast %207 : vector<8x1xi1> to vector<8x128xi1>
    %209 = vector.broadcast %cst_47 : f32 to vector<8x128xf32>
    %210 = arith.select %208, %206, %209 : vector<8x128xi1>, vector<8x128xf32>
    %211 = arith.addf %203, %210 : vector<8x128xf32>
    %c2_i32_48 = arith.constant 2 : i32
    %212 = vector.broadcast %c2_i32_48 : i32 to vector<8x1xi32>
    %213 = arith.cmpi eq, %28, %212 : vector<8x1xi32>
    %214 = vector.extract_strided_slice %194 {offsets = [0, 256], sizes = [8, 128], strides = [1, 1]} : vector<8x2048xf32> to vector<8x128xf32>
    %cst_49 = arith.constant 0.000000e+00 : f32
    %215 = vector.shape_cast %213 : vector<8x1xi1> to vector<8x1xi1>
    %216 = vector.broadcast %215 : vector<8x1xi1> to vector<8x128xi1>
    %217 = vector.broadcast %cst_49 : f32 to vector<8x128xf32>
    %218 = arith.select %216, %214, %217 : vector<8x128xi1>, vector<8x128xf32>
    %219 = arith.addf %211, %218 : vector<8x128xf32>
    %c3_i32_50 = arith.constant 3 : i32
    %220 = vector.broadcast %c3_i32_50 : i32 to vector<8x1xi32>
    %221 = arith.cmpi eq, %28, %220 : vector<8x1xi32>
    %222 = vector.extract_strided_slice %194 {offsets = [0, 384], sizes = [8, 128], strides = [1, 1]} : vector<8x2048xf32> to vector<8x128xf32>
    %cst_51 = arith.constant 0.000000e+00 : f32
    %223 = vector.shape_cast %221 : vector<8x1xi1> to vector<8x1xi1>
    %224 = vector.broadcast %223 : vector<8x1xi1> to vector<8x128xi1>
    %225 = vector.broadcast %cst_51 : f32 to vector<8x128xf32>
    %226 = arith.select %224, %222, %225 : vector<8x128xi1>, vector<8x128xf32>
    %227 = arith.addf %219, %226 : vector<8x128xf32>
    %c4_i32_52 = arith.constant 4 : i32
    %228 = vector.broadcast %c4_i32_52 : i32 to vector<8x1xi32>
    %229 = arith.cmpi eq, %28, %228 : vector<8x1xi32>
    %230 = vector.extract_strided_slice %194 {offsets = [0, 512], sizes = [8, 128], strides = [1, 1]} : vector<8x2048xf32> to vector<8x128xf32>
    %cst_53 = arith.constant 0.000000e+00 : f32
    %231 = vector.shape_cast %229 : vector<8x1xi1> to vector<8x1xi1>
    %232 = vector.broadcast %231 : vector<8x1xi1> to vector<8x128xi1>
    %233 = vector.broadcast %cst_53 : f32 to vector<8x128xf32>
    %234 = arith.select %232, %230, %233 : vector<8x128xi1>, vector<8x128xf32>
    %235 = arith.addf %227, %234 : vector<8x128xf32>
    %c5_i32_54 = arith.constant 5 : i32
    %236 = vector.broadcast %c5_i32_54 : i32 to vector<8x1xi32>
    %237 = arith.cmpi eq, %28, %236 : vector<8x1xi32>
    %238 = vector.extract_strided_slice %194 {offsets = [0, 640], sizes = [8, 128], strides = [1, 1]} : vector<8x2048xf32> to vector<8x128xf32>
    %cst_55 = arith.constant 0.000000e+00 : f32
    %239 = vector.shape_cast %237 : vector<8x1xi1> to vector<8x1xi1>
    %240 = vector.broadcast %239 : vector<8x1xi1> to vector<8x128xi1>
    %241 = vector.broadcast %cst_55 : f32 to vector<8x128xf32>
    %242 = arith.select %240, %238, %241 : vector<8x128xi1>, vector<8x128xf32>
    %243 = arith.addf %235, %242 : vector<8x128xf32>
    %c6_i32_56 = arith.constant 6 : i32
    %244 = vector.broadcast %c6_i32_56 : i32 to vector<8x1xi32>
    %245 = arith.cmpi eq, %28, %244 : vector<8x1xi32>
    %246 = vector.extract_strided_slice %194 {offsets = [0, 768], sizes = [8, 128], strides = [1, 1]} : vector<8x2048xf32> to vector<8x128xf32>
    %cst_57 = arith.constant 0.000000e+00 : f32
    %247 = vector.shape_cast %245 : vector<8x1xi1> to vector<8x1xi1>
    %248 = vector.broadcast %247 : vector<8x1xi1> to vector<8x128xi1>
    %249 = vector.broadcast %cst_57 : f32 to vector<8x128xf32>
    %250 = arith.select %248, %246, %249 : vector<8x128xi1>, vector<8x128xf32>
    %251 = arith.addf %243, %250 : vector<8x128xf32>
    %c7_i32_58 = arith.constant 7 : i32
    %252 = vector.broadcast %c7_i32_58 : i32 to vector<8x1xi32>
    %253 = arith.cmpi eq, %28, %252 : vector<8x1xi32>
    %254 = vector.extract_strided_slice %194 {offsets = [0, 896], sizes = [8, 128], strides = [1, 1]} : vector<8x2048xf32> to vector<8x128xf32>
    %cst_59 = arith.constant 0.000000e+00 : f32
    %255 = vector.shape_cast %253 : vector<8x1xi1> to vector<8x1xi1>
    %256 = vector.broadcast %255 : vector<8x1xi1> to vector<8x128xi1>
    %257 = vector.broadcast %cst_59 : f32 to vector<8x128xf32>
    %258 = arith.select %256, %254, %257 : vector<8x128xi1>, vector<8x128xf32>
    %259 = arith.addf %251, %258 : vector<8x128xf32>
    %c8_i32_60 = arith.constant 8 : i32
    %260 = vector.broadcast %c8_i32_60 : i32 to vector<8x1xi32>
    %261 = arith.cmpi eq, %28, %260 : vector<8x1xi32>
    %262 = vector.extract_strided_slice %194 {offsets = [0, 1024], sizes = [8, 128], strides = [1, 1]} : vector<8x2048xf32> to vector<8x128xf32>
    %cst_61 = arith.constant 0.000000e+00 : f32
    %263 = vector.shape_cast %261 : vector<8x1xi1> to vector<8x1xi1>
    %264 = vector.broadcast %263 : vector<8x1xi1> to vector<8x128xi1>
    %265 = vector.broadcast %cst_61 : f32 to vector<8x128xf32>
    %266 = arith.select %264, %262, %265 : vector<8x128xi1>, vector<8x128xf32>
    %267 = arith.addf %259, %266 : vector<8x128xf32>
    %c9_i32_62 = arith.constant 9 : i32
    %268 = vector.broadcast %c9_i32_62 : i32 to vector<8x1xi32>
    %269 = arith.cmpi eq, %28, %268 : vector<8x1xi32>
    %270 = vector.extract_strided_slice %194 {offsets = [0, 1152], sizes = [8, 128], strides = [1, 1]} : vector<8x2048xf32> to vector<8x128xf32>
    %cst_63 = arith.constant 0.000000e+00 : f32
    %271 = vector.shape_cast %269 : vector<8x1xi1> to vector<8x1xi1>
    %272 = vector.broadcast %271 : vector<8x1xi1> to vector<8x128xi1>
    %273 = vector.broadcast %cst_63 : f32 to vector<8x128xf32>
    %274 = arith.select %272, %270, %273 : vector<8x128xi1>, vector<8x128xf32>
    %275 = arith.addf %267, %274 : vector<8x128xf32>
    %c10_i32_64 = arith.constant 10 : i32
    %276 = vector.broadcast %c10_i32_64 : i32 to vector<8x1xi32>
    %277 = arith.cmpi eq, %28, %276 : vector<8x1xi32>
    %278 = vector.extract_strided_slice %194 {offsets = [0, 1280], sizes = [8, 128], strides = [1, 1]} : vector<8x2048xf32> to vector<8x128xf32>
    %cst_65 = arith.constant 0.000000e+00 : f32
    %279 = vector.shape_cast %277 : vector<8x1xi1> to vector<8x1xi1>
    %280 = vector.broadcast %279 : vector<8x1xi1> to vector<8x128xi1>
    %281 = vector.broadcast %cst_65 : f32 to vector<8x128xf32>
    %282 = arith.select %280, %278, %281 : vector<8x128xi1>, vector<8x128xf32>
    %283 = arith.addf %275, %282 : vector<8x128xf32>
    %c11_i32_66 = arith.constant 11 : i32
    %284 = vector.broadcast %c11_i32_66 : i32 to vector<8x1xi32>
    %285 = arith.cmpi eq, %28, %284 : vector<8x1xi32>
    %286 = vector.extract_strided_slice %194 {offsets = [0, 1408], sizes = [8, 128], strides = [1, 1]} : vector<8x2048xf32> to vector<8x128xf32>
    %cst_67 = arith.constant 0.000000e+00 : f32
    %287 = vector.shape_cast %285 : vector<8x1xi1> to vector<8x1xi1>
    %288 = vector.broadcast %287 : vector<8x1xi1> to vector<8x128xi1>
    %289 = vector.broadcast %cst_67 : f32 to vector<8x128xf32>
    %290 = arith.select %288, %286, %289 : vector<8x128xi1>, vector<8x128xf32>
    %291 = arith.addf %283, %290 : vector<8x128xf32>
    %c12_i32_68 = arith.constant 12 : i32
    %292 = vector.broadcast %c12_i32_68 : i32 to vector<8x1xi32>
    %293 = arith.cmpi eq, %28, %292 : vector<8x1xi32>
    %294 = vector.extract_strided_slice %194 {offsets = [0, 1536], sizes = [8, 128], strides = [1, 1]} : vector<8x2048xf32> to vector<8x128xf32>
    %cst_69 = arith.constant 0.000000e+00 : f32
    %295 = vector.shape_cast %293 : vector<8x1xi1> to vector<8x1xi1>
    %296 = vector.broadcast %295 : vector<8x1xi1> to vector<8x128xi1>
    %297 = vector.broadcast %cst_69 : f32 to vector<8x128xf32>
    %298 = arith.select %296, %294, %297 : vector<8x128xi1>, vector<8x128xf32>
    %299 = arith.addf %291, %298 : vector<8x128xf32>
    %c13_i32_70 = arith.constant 13 : i32
    %300 = vector.broadcast %c13_i32_70 : i32 to vector<8x1xi32>
    %301 = arith.cmpi eq, %28, %300 : vector<8x1xi32>
    %302 = vector.extract_strided_slice %194 {offsets = [0, 1664], sizes = [8, 128], strides = [1, 1]} : vector<8x2048xf32> to vector<8x128xf32>
    %cst_71 = arith.constant 0.000000e+00 : f32
    %303 = vector.shape_cast %301 : vector<8x1xi1> to vector<8x1xi1>
    %304 = vector.broadcast %303 : vector<8x1xi1> to vector<8x128xi1>
    %305 = vector.broadcast %cst_71 : f32 to vector<8x128xf32>
    %306 = arith.select %304, %302, %305 : vector<8x128xi1>, vector<8x128xf32>
    %307 = arith.addf %299, %306 : vector<8x128xf32>
    %c14_i32_72 = arith.constant 14 : i32
    %308 = vector.broadcast %c14_i32_72 : i32 to vector<8x1xi32>
    %309 = arith.cmpi eq, %28, %308 : vector<8x1xi32>
    %310 = vector.extract_strided_slice %194 {offsets = [0, 1792], sizes = [8, 128], strides = [1, 1]} : vector<8x2048xf32> to vector<8x128xf32>
    %cst_73 = arith.constant 0.000000e+00 : f32
    %311 = vector.shape_cast %309 : vector<8x1xi1> to vector<8x1xi1>
    %312 = vector.broadcast %311 : vector<8x1xi1> to vector<8x128xi1>
    %313 = vector.broadcast %cst_73 : f32 to vector<8x128xf32>
    %314 = arith.select %312, %310, %313 : vector<8x128xi1>, vector<8x128xf32>
    %315 = arith.addf %307, %314 : vector<8x128xf32>
    %c15_i32_74 = arith.constant 15 : i32
    %316 = vector.broadcast %c15_i32_74 : i32 to vector<8x1xi32>
    %317 = arith.cmpi eq, %28, %316 : vector<8x1xi32>
    %318 = vector.extract_strided_slice %194 {offsets = [0, 1920], sizes = [8, 128], strides = [1, 1]} : vector<8x2048xf32> to vector<8x128xf32>
    %cst_75 = arith.constant 0.000000e+00 : f32
    %319 = vector.shape_cast %317 : vector<8x1xi1> to vector<8x1xi1>
    %320 = vector.broadcast %319 : vector<8x1xi1> to vector<8x128xi1>
    %321 = vector.broadcast %cst_75 : f32 to vector<8x128xf32>
    %322 = arith.select %320, %318, %321 : vector<8x128xi1>, vector<8x128xf32>
    %323 = arith.addf %315, %322 : vector<8x128xf32>
    %324 = vector.extract_strided_slice %323 {offsets = [0, 0], sizes = [8, 16], strides = [1, 1]} : vector<8x128xf32> to vector<8x16xf32>
    %cst_76 = arith.constant -6.90675497 : f32
    %cst_77 = arith.constant 6.90675497 : f32
    %325 = vector.broadcast %cst_76 : f32 to vector<8x16xf32>
    %326 = arith.maximumf %325, %324 : vector<8x16xf32>
    %327 = vector.broadcast %cst_77 : f32 to vector<8x16xf32>
    %328 = arith.minimumf %327, %326 : vector<8x16xf32>
    %c8_i32_78 = arith.constant 8 : i32
    %329 = vector.broadcast %c8_i32_78 : i32 to vector<1x16xi32>
    %330 = arith.cmpi eq, %186, %329 : vector<1x16xi32>
    %cst_79 = arith.constant 1.000000e+00 : f32
    %331 = vector.shape_cast %330 : vector<1x16xi1> to vector<1x16xi1>
    %332 = vector.broadcast %331 : vector<1x16xi1> to vector<8x16xi1>
    %333 = vector.broadcast %cst_79 : f32 to vector<8x16xf32>
    %334 = arith.select %332, %333, %328 : vector<8x16xi1>, vector<8x16xf32>
    %c40 = arith.constant 40 : index
    %c0_80 = arith.constant 0 : index
    %335 = vector.load %arg3[%c40, %c0_80] : memref<56x2048xf32, #tpu.memory_space<vmem>>, vector<16x2048xf32>
    %cst_81 = arith.constant dense<0.000000e+00> : vector<8x2048xf32>
    %336 = tpu.matmul %334, %335, %cst_81 {dimension_numbers = #tpu.dot_dimension_numbers<[1], [0], [0], [1], [0, 0, 1, 1], [], []>} : vector<8x16xf32>, vector<16x2048xf32>, vector<8x2048xf32> -> vector<8x2048xf32>
    %cst_82 = arith.constant 0.000000e+00 : f32
    %337 = vector.broadcast %cst_82 : f32 to vector<8x128xf32>
    %c0_i32_83 = arith.constant 0 : i32
    %338 = vector.broadcast %c0_i32_83 : i32 to vector<8x1xi32>
    %339 = arith.cmpi eq, %38, %338 : vector<8x1xi32>
    %340 = vector.extract_strided_slice %336 {offsets = [0, 0], sizes = [8, 128], strides = [1, 1]} : vector<8x2048xf32> to vector<8x128xf32>
    %cst_84 = arith.constant 0.000000e+00 : f32
    %341 = vector.shape_cast %339 : vector<8x1xi1> to vector<8x1xi1>
    %342 = vector.broadcast %341 : vector<8x1xi1> to vector<8x128xi1>
    %343 = vector.broadcast %cst_84 : f32 to vector<8x128xf32>
    %344 = arith.select %342, %340, %343 : vector<8x128xi1>, vector<8x128xf32>
    %345 = arith.addf %337, %344 : vector<8x128xf32>
    %c1_i32_85 = arith.constant 1 : i32
    %346 = vector.broadcast %c1_i32_85 : i32 to vector<8x1xi32>
    %347 = arith.cmpi eq, %38, %346 : vector<8x1xi32>
    %348 = vector.extract_strided_slice %336 {offsets = [0, 128], sizes = [8, 128], strides = [1, 1]} : vector<8x2048xf32> to vector<8x128xf32>
    %cst_86 = arith.constant 0.000000e+00 : f32
    %349 = vector.shape_cast %347 : vector<8x1xi1> to vector<8x1xi1>
    %350 = vector.broadcast %349 : vector<8x1xi1> to vector<8x128xi1>
    %351 = vector.broadcast %cst_86 : f32 to vector<8x128xf32>
    %352 = arith.select %350, %348, %351 : vector<8x128xi1>, vector<8x128xf32>
    %353 = arith.addf %345, %352 : vector<8x128xf32>
    %c2_i32_87 = arith.constant 2 : i32
    %354 = vector.broadcast %c2_i32_87 : i32 to vector<8x1xi32>
    %355 = arith.cmpi eq, %38, %354 : vector<8x1xi32>
    %356 = vector.extract_strided_slice %336 {offsets = [0, 256], sizes = [8, 128], strides = [1, 1]} : vector<8x2048xf32> to vector<8x128xf32>
    %cst_88 = arith.constant 0.000000e+00 : f32
    %357 = vector.shape_cast %355 : vector<8x1xi1> to vector<8x1xi1>
    %358 = vector.broadcast %357 : vector<8x1xi1> to vector<8x128xi1>
    %359 = vector.broadcast %cst_88 : f32 to vector<8x128xf32>
    %360 = arith.select %358, %356, %359 : vector<8x128xi1>, vector<8x128xf32>
    %361 = arith.addf %353, %360 : vector<8x128xf32>
    %c3_i32_89 = arith.constant 3 : i32
    %362 = vector.broadcast %c3_i32_89 : i32 to vector<8x1xi32>
    %363 = arith.cmpi eq, %38, %362 : vector<8x1xi32>
    %364 = vector.extract_strided_slice %336 {offsets = [0, 384], sizes = [8, 128], strides = [1, 1]} : vector<8x2048xf32> to vector<8x128xf32>
    %cst_90 = arith.constant 0.000000e+00 : f32
    %365 = vector.shape_cast %363 : vector<8x1xi1> to vector<8x1xi1>
    %366 = vector.broadcast %365 : vector<8x1xi1> to vector<8x128xi1>
    %367 = vector.broadcast %cst_90 : f32 to vector<8x128xf32>
    %368 = arith.select %366, %364, %367 : vector<8x128xi1>, vector<8x128xf32>
    %369 = arith.addf %361, %368 : vector<8x128xf32>
    %c4_i32_91 = arith.constant 4 : i32
    %370 = vector.broadcast %c4_i32_91 : i32 to vector<8x1xi32>
    %371 = arith.cmpi eq, %38, %370 : vector<8x1xi32>
    %372 = vector.extract_strided_slice %336 {offsets = [0, 512], sizes = [8, 128], strides = [1, 1]} : vector<8x2048xf32> to vector<8x128xf32>
    %cst_92 = arith.constant 0.000000e+00 : f32
    %373 = vector.shape_cast %371 : vector<8x1xi1> to vector<8x1xi1>
    %374 = vector.broadcast %373 : vector<8x1xi1> to vector<8x128xi1>
    %375 = vector.broadcast %cst_92 : f32 to vector<8x128xf32>
    %376 = arith.select %374, %372, %375 : vector<8x128xi1>, vector<8x128xf32>
    %377 = arith.addf %369, %376 : vector<8x128xf32>
    %c5_i32_93 = arith.constant 5 : i32
    %378 = vector.broadcast %c5_i32_93 : i32 to vector<8x1xi32>
    %379 = arith.cmpi eq, %38, %378 : vector<8x1xi32>
    %380 = vector.extract_strided_slice %336 {offsets = [0, 640], sizes = [8, 128], strides = [1, 1]} : vector<8x2048xf32> to vector<8x128xf32>
    %cst_94 = arith.constant 0.000000e+00 : f32
    %381 = vector.shape_cast %379 : vector<8x1xi1> to vector<8x1xi1>
    %382 = vector.broadcast %381 : vector<8x1xi1> to vector<8x128xi1>
    %383 = vector.broadcast %cst_94 : f32 to vector<8x128xf32>
    %384 = arith.select %382, %380, %383 : vector<8x128xi1>, vector<8x128xf32>
    %385 = arith.addf %377, %384 : vector<8x128xf32>
    %c6_i32_95 = arith.constant 6 : i32
    %386 = vector.broadcast %c6_i32_95 : i32 to vector<8x1xi32>
    %387 = arith.cmpi eq, %38, %386 : vector<8x1xi32>
    %388 = vector.extract_strided_slice %336 {offsets = [0, 768], sizes = [8, 128], strides = [1, 1]} : vector<8x2048xf32> to vector<8x128xf32>
    %cst_96 = arith.constant 0.000000e+00 : f32
    %389 = vector.shape_cast %387 : vector<8x1xi1> to vector<8x1xi1>
    %390 = vector.broadcast %389 : vector<8x1xi1> to vector<8x128xi1>
    %391 = vector.broadcast %cst_96 : f32 to vector<8x128xf32>
    %392 = arith.select %390, %388, %391 : vector<8x128xi1>, vector<8x128xf32>
    %393 = arith.addf %385, %392 : vector<8x128xf32>
    %c7_i32_97 = arith.constant 7 : i32
    %394 = vector.broadcast %c7_i32_97 : i32 to vector<8x1xi32>
    %395 = arith.cmpi eq, %38, %394 : vector<8x1xi32>
    %396 = vector.extract_strided_slice %336 {offsets = [0, 896], sizes = [8, 128], strides = [1, 1]} : vector<8x2048xf32> to vector<8x128xf32>
    %cst_98 = arith.constant 0.000000e+00 : f32
    %397 = vector.shape_cast %395 : vector<8x1xi1> to vector<8x1xi1>
    %398 = vector.broadcast %397 : vector<8x1xi1> to vector<8x128xi1>
    %399 = vector.broadcast %cst_98 : f32 to vector<8x128xf32>
    %400 = arith.select %398, %396, %399 : vector<8x128xi1>, vector<8x128xf32>
    %401 = arith.addf %393, %400 : vector<8x128xf32>
    %c8_i32_99 = arith.constant 8 : i32
    %402 = vector.broadcast %c8_i32_99 : i32 to vector<8x1xi32>
    %403 = arith.cmpi eq, %38, %402 : vector<8x1xi32>
    %404 = vector.extract_strided_slice %336 {offsets = [0, 1024], sizes = [8, 128], strides = [1, 1]} : vector<8x2048xf32> to vector<8x128xf32>
    %cst_100 = arith.constant 0.000000e+00 : f32
    %405 = vector.shape_cast %403 : vector<8x1xi1> to vector<8x1xi1>
    %406 = vector.broadcast %405 : vector<8x1xi1> to vector<8x128xi1>
    %407 = vector.broadcast %cst_100 : f32 to vector<8x128xf32>
    %408 = arith.select %406, %404, %407 : vector<8x128xi1>, vector<8x128xf32>
    %409 = arith.addf %401, %408 : vector<8x128xf32>
    %c9_i32_101 = arith.constant 9 : i32
    %410 = vector.broadcast %c9_i32_101 : i32 to vector<8x1xi32>
    %411 = arith.cmpi eq, %38, %410 : vector<8x1xi32>
    %412 = vector.extract_strided_slice %336 {offsets = [0, 1152], sizes = [8, 128], strides = [1, 1]} : vector<8x2048xf32> to vector<8x128xf32>
    %cst_102 = arith.constant 0.000000e+00 : f32
    %413 = vector.shape_cast %411 : vector<8x1xi1> to vector<8x1xi1>
    %414 = vector.broadcast %413 : vector<8x1xi1> to vector<8x128xi1>
    %415 = vector.broadcast %cst_102 : f32 to vector<8x128xf32>
    %416 = arith.select %414, %412, %415 : vector<8x128xi1>, vector<8x128xf32>
    %417 = arith.addf %409, %416 : vector<8x128xf32>
    %c10_i32_103 = arith.constant 10 : i32
    %418 = vector.broadcast %c10_i32_103 : i32 to vector<8x1xi32>
    %419 = arith.cmpi eq, %38, %418 : vector<8x1xi32>
    %420 = vector.extract_strided_slice %336 {offsets = [0, 1280], sizes = [8, 128], strides = [1, 1]} : vector<8x2048xf32> to vector<8x128xf32>
    %cst_104 = arith.constant 0.000000e+00 : f32
    %421 = vector.shape_cast %419 : vector<8x1xi1> to vector<8x1xi1>
    %422 = vector.broadcast %421 : vector<8x1xi1> to vector<8x128xi1>
    %423 = vector.broadcast %cst_104 : f32 to vector<8x128xf32>
    %424 = arith.select %422, %420, %423 : vector<8x128xi1>, vector<8x128xf32>
    %425 = arith.addf %417, %424 : vector<8x128xf32>
    %c11_i32_105 = arith.constant 11 : i32
    %426 = vector.broadcast %c11_i32_105 : i32 to vector<8x1xi32>
    %427 = arith.cmpi eq, %38, %426 : vector<8x1xi32>
    %428 = vector.extract_strided_slice %336 {offsets = [0, 1408], sizes = [8, 128], strides = [1, 1]} : vector<8x2048xf32> to vector<8x128xf32>
    %cst_106 = arith.constant 0.000000e+00 : f32
    %429 = vector.shape_cast %427 : vector<8x1xi1> to vector<8x1xi1>
    %430 = vector.broadcast %429 : vector<8x1xi1> to vector<8x128xi1>
    %431 = vector.broadcast %cst_106 : f32 to vector<8x128xf32>
    %432 = arith.select %430, %428, %431 : vector<8x128xi1>, vector<8x128xf32>
    %433 = arith.addf %425, %432 : vector<8x128xf32>
    %c12_i32_107 = arith.constant 12 : i32
    %434 = vector.broadcast %c12_i32_107 : i32 to vector<8x1xi32>
    %435 = arith.cmpi eq, %38, %434 : vector<8x1xi32>
    %436 = vector.extract_strided_slice %336 {offsets = [0, 1536], sizes = [8, 128], strides = [1, 1]} : vector<8x2048xf32> to vector<8x128xf32>
    %cst_108 = arith.constant 0.000000e+00 : f32
    %437 = vector.shape_cast %435 : vector<8x1xi1> to vector<8x1xi1>
    %438 = vector.broadcast %437 : vector<8x1xi1> to vector<8x128xi1>
    %439 = vector.broadcast %cst_108 : f32 to vector<8x128xf32>
    %440 = arith.select %438, %436, %439 : vector<8x128xi1>, vector<8x128xf32>
    %441 = arith.addf %433, %440 : vector<8x128xf32>
    %c13_i32_109 = arith.constant 13 : i32
    %442 = vector.broadcast %c13_i32_109 : i32 to vector<8x1xi32>
    %443 = arith.cmpi eq, %38, %442 : vector<8x1xi32>
    %444 = vector.extract_strided_slice %336 {offsets = [0, 1664], sizes = [8, 128], strides = [1, 1]} : vector<8x2048xf32> to vector<8x128xf32>
    %cst_110 = arith.constant 0.000000e+00 : f32
    %445 = vector.shape_cast %443 : vector<8x1xi1> to vector<8x1xi1>
    %446 = vector.broadcast %445 : vector<8x1xi1> to vector<8x128xi1>
    %447 = vector.broadcast %cst_110 : f32 to vector<8x128xf32>
    %448 = arith.select %446, %444, %447 : vector<8x128xi1>, vector<8x128xf32>
    %449 = arith.addf %441, %448 : vector<8x128xf32>
    %c14_i32_111 = arith.constant 14 : i32
    %450 = vector.broadcast %c14_i32_111 : i32 to vector<8x1xi32>
    %451 = arith.cmpi eq, %38, %450 : vector<8x1xi32>
    %452 = vector.extract_strided_slice %336 {offsets = [0, 1792], sizes = [8, 128], strides = [1, 1]} : vector<8x2048xf32> to vector<8x128xf32>
    %cst_112 = arith.constant 0.000000e+00 : f32
    %453 = vector.shape_cast %451 : vector<8x1xi1> to vector<8x1xi1>
    %454 = vector.broadcast %453 : vector<8x1xi1> to vector<8x128xi1>
    %455 = vector.broadcast %cst_112 : f32 to vector<8x128xf32>
    %456 = arith.select %454, %452, %455 : vector<8x128xi1>, vector<8x128xf32>
    %457 = arith.addf %449, %456 : vector<8x128xf32>
    %c15_i32_113 = arith.constant 15 : i32
    %458 = vector.broadcast %c15_i32_113 : i32 to vector<8x1xi32>
    %459 = arith.cmpi eq, %38, %458 : vector<8x1xi32>
    %460 = vector.extract_strided_slice %336 {offsets = [0, 1920], sizes = [8, 128], strides = [1, 1]} : vector<8x2048xf32> to vector<8x128xf32>
    %cst_114 = arith.constant 0.000000e+00 : f32
    %461 = vector.shape_cast %459 : vector<8x1xi1> to vector<8x1xi1>
    %462 = vector.broadcast %461 : vector<8x1xi1> to vector<8x128xi1>
    %463 = vector.broadcast %cst_114 : f32 to vector<8x128xf32>
    %464 = arith.select %462, %460, %463 : vector<8x128xi1>, vector<8x128xf32>
    %465 = arith.addf %457, %464 : vector<8x128xf32>
    %466 = arith.negf %465 : vector<8x128xf32>
    %467 = math.exp %466 : vector<8x128xf32>
    %cst_115 = arith.constant 1.000000e+00 : f32
    %468 = vector.broadcast %cst_115 : f32 to vector<8x128xf32>
    %469 = arith.addf %468, %467 : vector<8x128xf32>
    %470 = arith.divf %468, %469 : vector<8x128xf32>
    %cst_116 = arith.constant 1.000000e-03 : f32
    %cst_117 = arith.constant 9.990000e-01 : f32
    %471 = vector.broadcast %cst_116 : f32 to vector<8x128xf32>
    %472 = arith.maximumf %471, %470 : vector<8x128xf32>
    %473 = vector.broadcast %cst_117 : f32 to vector<8x128xf32>
    %474 = arith.minimumf %473, %472 : vector<8x128xf32>
    %c0_118 = arith.constant 0 : index
    %c0_119 = arith.constant 0 : index
    %475 = vector.load %arg4[%c0_118, %c0_119] : memref<8x128xf32, #tpu.memory_space<vmem>>, vector<8x128xf32>
    tpu.vector_store %arg4[%c0_118, %c0_119], %474 {strides = array<i32>} : memref<8x128xf32, #tpu.memory_space<vmem>>, vector<8x128xf32>,
    return
  }
  func.func @transform_0(%arg0: i32) -> (i32, i32) {
    %c0_i32 = arith.constant 0 : i32
    %c0_i32_0 = arith.constant 0 : i32
    return %arg0, %c0_i32 : i32, i32
  }
  func.func @transform_1(%arg0: i32) -> (i32, i32) {
    %c0_i32 = arith.constant 0 : i32
    %c0_i32_0 = arith.constant 0 : i32
    %c0_i32_1 = arith.constant 0 : i32
    return %c0_i32, %c0_i32_0 : i32, i32
  }
  func.func @transform_2(%arg0: i32) -> (i32, i32) {
    %c0_i32 = arith.constant 0 : i32
    %c0_i32_0 = arith.constant 0 : i32
    %c0_i32_1 = arith.constant 0 : i32
    return %c0_i32, %c0_i32_0 : i32, i32
  }
  func.func @transform_3(%arg0: i32) -> (i32, i32) {
    %c0_i32 = arith.constant 0 : i32
    %c0_i32_0 = arith.constant 0 : i32
    return %arg0, %c0_i32 : i32, i32
  }
}

</mosaic_0001>

<bundles_post_ra>
// kernel: _gln_forward_padded.1
= control target key start
LH: loop header
LB: loop body
LE: loop exit
PB: predicated region body
PF: predicated region fallthrough
CT: control target
= control target key end

     0   :  { %8 = vsyncpa [#allocation3], 0  ;;  %s3095_s0 = inlined_call_operand.vmem [shape: f32[16,24], index: 0, kind: input, shape index: {}]   ;;  %s3096_s1 = inlined_call_operand.vmem [shape: f32[24,12], index: 1, kind: input, shape index: {}]   ;;  %s3097_s2 = inlined_call_operand.hbm [shape: f32[56,2048], index: 2, kind: input, shape index: {}]   ;;  %s3098_s3 = inlined_call_operand.hbm [shape: f32[16,128], index: 3, kind: output, shape index: {}]  }
   0x1   :  { %9 = vsyncpa [#allocation4], 0 }
   0x2   :  { %11 = vsyncpa [#allocation4 + $0x1], 0  ;;  %s2821_s12 = smov 0   ;;  %s2823_s13 = smov 0  }
   0x3   :  { %s2825_s14 = smov 0   ;;  %s2827_s15 = smov 0  }
   0x4 LB: > { %s2842_s16 = sadd.s32 4294967295, %s2787_s15   ;;  %s2471_s17 = sadd.s32 4294967294, %s2787_s15   ;;  %s2787_s15 = sphi %s2827_s15, %s3114_s15   ;;  %s2783_s14 = sphi %s2825_s14, %s3113_s14   ;;  %s2779_s13 = sphi %s2823_s13, %s3112_s13   ;;  %s2775_s12 = sphi %s2821_s12, %s3111_s12  }
   0x5   : > { %s2846_s18 = sadd.s32 1, %s2787_s15   ;;  %s92_s19 = sadd.s32 1, %s2783_s14 }
   0x6   : > { %s89_s20 = ssub.s32 %s2787_s15, %s2846_s18  ;;  %p102_p0 = scmp.ne.s32.totalorder %s2783_s14, %s2779_s13 }
   0x7   : > { %p90_p1 = scmp.eq.s32.totalorder %s89_s20, 0  ;;  %p103_p2 = scmp.eq.s32.totalorder %s2842_s16, 1 }
   0x8   : > { %p108_p3 = scmp.ne.s32.totalorder %s2779_s13, %s2775_s12  ;;  %p109_p4 = scmp.eq.s32.totalorder %s2471_s17, 1 }
   0x9   : > { %s2857_s21 = scalar_select %p90_p1, %s2783_s14, %s92_s19  }
   0xa   : > { %p2859_p5 = por %p103_p2, %p102_p0  ;;  %p2863_p6 = por %p109_p4, %p108_p3 }
   0xb   : > { %p2472_p7 = scmp.ge.s32.totalorder %s2787_s15, 1  ;;  %p116_p8 = scmp.lt.s32.totalorder %s2787_s15, 3 }
   0xc   : > { %s3102_s22 = scalar_select %p2859_p5, 1, 0 }
   0xd   : > { %s3103_s23 = scalar_select %p2863_p6, 1, 0 }
   0xe   : > { %p3099_p9 = scmp.eq.s32.totalorder %s2842_s16, 0  ;;  %p2870_p10 = pnand %p2472_p7, %p116_p8 }
   0xf   : > { %s2789_s25 = smov [#allocation2]   ;;  %s2693_s30 = scalar_lea.hbm %s3097_s2, 14336 }
  0x10   : > { %s3104_s24 = scalar_select %p2870_p10, 1, 0 }
  0x11   : > { %s131_s26 = sshll.u32 %s2789_s25, 4  ;;  %p2635_p11 = pneg %p2870_p10  ;;  %s132_s26 = int_to_ptr.vmem [resolvable:$true] %s131_s26 }
  0x12   : > { %p2694_p13 = scmp.ne.s32.totalorder %s3097_s2, %s2693_s30  ;;  %p2700_p3 = scmp.lt.u32.totalorder %s2693_s30, %s3097_s2 }
  0x13   : > { %p2878_p12 = pnand %p3099_p9, %p2635_p11 }
  0x15   : > { %p2695_p0 = pneg %p2878_p12 }
  0x17   : > { %p2696_p1 = pnand %p2695_p0, %p2694_p13 }
  0x19   : > { %p2697_p2 = pneg %p2696_p1 }
  0x1b   : > { %p2702_p4 = pnand %p2700_p3, %p2697_p2 }
  0x1d   : > { %2705 = shalt.err (!%p2702_p4)
}
  0x1e   : > { %s2706_s8 = scalar_lea.vmem %s132_s26, 14336  ;;  %p2714_p9 = scmp.lt.s32.totalorder %s132_s26, %s132_s26 }
  0x1f   : > { %p2707_p7 = scmp.ne.s32.totalorder %s132_s26, %s2706_s8  ;;  %p2715_p6 = scmp.lt.s32.totalorder %s2706_s8, %s2706_s8 }
  0x21   : > { %p2709_p8 = pnand %p2707_p7, %p2695_p0  ;;  %p2716_p5 = por %p2715_p6, %p2714_p9 }
  0x23   : > { %p2710_p11 = pneg %p2709_p8 }
  0x25   : > { %p2717_p10 = pnand %p2716_p5, %p2710_p11 }
  0x27   : > { %2720 = shalt.err (!%p2717_p10)
}
  0x28   : > { %s2790_s9 = smov 2048   ;;  %s2791_s10 = smov 128  }
  0x29   : > { %2638 = dma.hbm_to_vmem [thread:$0]  (!%p2878_p12), %s3097_s2, 14336, %s132_s26, [#allocation3], %s2790_s9, %s2790_s9, %s2791_s10  }
  0x2a   : > { %p3106_p13 = scmp.ne.s32.totalorder %s3104_s24, 0 }
  0x2b   : > { %p3107_p1 = scmp.eq.s32.totalorder (!%p3106_p13), %s2842_s16, 0 }
  0x2c   : > { %154 = sbr.rel (%p3106_p13) target bundleno = 1010 (0x3f2), region = 32 }
  0x33   : > { %2766 = dma.done.wait (%p3107_p1), [#allocation3], 14336   ;;  %p3108_p0 = pmov %p3107_p1 }
  0x34   : > { %p177_p5 = scmp.lt.s32.totalorder %s2842_s16, 1  ;;  %v2792_v0 = vmov 0.0|0.0   ;;  %vm2793_vm0 = vmmov 0   ;;  %v2794_v1 = vmov 0.0   ;;  %v259_v2 = vlaneseq  ;;  %v182_v3 = vld [vmem:[%s3096_s1] sm:$0xff]  ;;  %v183_v4 = vld [vmem:[%s3096_s1 + $0x8] sm:$0xff] }
  0x35   : > { %2768 = vsyncadd (%p3108_p0), [#allocation3], 4294952960  ;;  %2524 = vmatprep.subr.bf16.mxu0 %v2792_v0  ;;  %2521 = vmatprep.mubr.msk.f32.mxu0 %vm2793_vm0, %v2794_v1  ;;  %v2525_v5 = vpack.c.bf16 %v183_v4, %v182_v3  ;;  %v303_v8 = vld [vmem:[#allocation2 + $0x8] sm:$0xff]  ;;  %v305_v12 = vld [vmem:[#allocation2 + $0x18] sm:$0xff]  ;;  %vm185_vm1 = vcmask 195584   ;;  %vm266_vm3 = vcmask 31744  }
  0x36   : > { %s178_s19 = scalar_select %p177_p5, %s2842_s16, 1  ;;  %417 = vmatprep.mubr.f32.mxu1 %v2794_v1  ;;  %v2917_v7 = vand.u32 127, %v259_v2  ;;  %v319_v9 = vld [vmem:[#allocation2 + $0x88] sm:$0xff]  ;;  %v321_v13 = vld [vmem:[#allocation2 + $0x98] sm:$0xff]  ;;  %v302_v14 = vld [vmem:[#allocation2] sm:$0xff] }
  0x37   : > { %v2527_v11 = vpack.c.bf16 %v319_v9, %v303_v8  ;;  %2526 = vmatpush3.bf16.msra.mxu0 %v2525_v5  ;;  %v318_v15 = vld [vmem:[#allocation2 + $0x80] sm:$0xff]  ;;  %v304_v16 = vld [vmem:[#allocation2 + $0x10] sm:$0xff]  ;;  %v2531_v20 = vpack.c.bf16 %v321_v13, %v305_v12  ;;  %v335_v22 = vld [vmem:[#allocation2 + $0x108] sm:$0xff]  ;;  %s2796_s6 = smov 4   ;;  %s2797_s7 = smov 8  }
  0x38   : > { %s2478_s20 = sshll.u32 %s178_s19, 3  ;;  %v320_v17 = vld [vmem:[#allocation2 + $0x90] sm:$0xff]  ;;  %2519 = vmatprep.subr.mxu0 %v2794_v1  ;;  %v2529_v21 = vpack.c.bf16 %v318_v15, %v302_v14  ;;  %vm298_vm2 = vcmp.eq.s32.totalorder %v2917_v7, 16  ;;  %v307_v24 = vld [vmem:[#allocation2 + $0x28] sm:$0xff]  ;;  %v337_v26 = vld [vmem:[#allocation2 + $0x118] sm:$0xff]  ;;  %v261_v14 = vsub.s32 3, %v2917_v7 }
  0x39   : > { %s180_s26 = scalar_lea.vmem %s3095_s0, %s2478_s20  ;;  %v184_v18 = vld [vmem:[%s3096_s1 + $0x10] sm:$0xff]  ;;  %2528 = vmatprep.subr.bf16.mxu1 %v2527_v11  ;;  %v2533_v23 = vpack.c.bf16 %v320_v17, %v304_v16  ;;  %v323_v25 = vld [vmem:[#allocation2 + $0xa8] sm:$0xff]  ;;  %v334_v27 = vld [vmem:[#allocation2 + $0x100] sm:$0xff]  ;;  %v2795_v15 = vmov 1   ;;  %s2798_s8 = smov 124  }
  0x3a   : > { %v181_v6 = vld [vmem:[%s180_s26] sm:$0xff]  ;;  %2530 = vmatpush1.bf16.msra.mxu1 %v2529_v21  ;;  %v2535_v29 = vpack.c.bf16 %v323_v25, %v307_v24  ;;  %v309_v30 = vld [vmem:[#allocation2 + $0x38] sm:$0xff]  ;;  %v308_v35 = vld [vmem:[#allocation2 + $0x30] sm:$0xff]  ;;  %v262_v16 = vshll.u32 %v2795_v15, %v261_v14  ;;  %s2799_s9 = smov 120   ;;  %s174_s10 = sand.u32 1, %s2779_s13  }
  0x3b   : > { %v296_v10 = vmax.f32 %v181_v6, 0.001  ;;  %v306_v28 = vld [vmem:[#allocation2 + $0x20] sm:$0xff]  ;;  %2520 = vmatpush3.msra.mxu0 %v184_v18  ;;  %357 = vmatprep.subr.mxu1 %v335_v22  ;;  %v325_v31 = vld [vmem:[#allocation2 + $0xb8] sm:$0xff]  ;;  %v324_v36 = vld [vmem:[#allocation2 + $0xb0] sm:$0xff]  ;;  %s2477_s11 = sshll.u32 %s174_s10, 3 }
  0x3c   : > { %v322_v32 = vld [vmem:[#allocation2 + $0xa0] sm:$0xff]  ;;  %2522 = vmatmul.mubr.msk.f32.vlgmr.msra.gmra.mrb[0].mxu0 %vm185_vm1, %v181_v6  ;;  %2532 = vmatprep.subr.bf16.mxu0 %v2531_v20  ;;  %v336_v37 = vld [vmem:[#allocation2 + $0x110] sm:$0xff]  ;;  %v2539_v38 = vpack.c.bf16 %v325_v31, %v309_v30  ;;  %v339_v39 = vld [vmem:[#allocation2 + $0x128] sm:$0xff]  ;;  %v2541_v42 = vpack.c.bf16 %v324_v36, %v308_v35  ;;  %v263_v17 = vcvt.s32.f32 %v262_v16  ;;  %s2508_s17 = sshll.u32 %s2842_s16, 7  ;;  %s176_s19 = scalar_lea.vmem [#allocation5], %s2477_s11 }
  0x3d   : > { %v297_v19 = vmin.f32 %v296_v10, 0.999  ;;  %v2537_v34 = vpack.c.bf16 %v322_v32, %v306_v28  ;;  %2534 = vmatpush1.bf16.msra.mxu0 %v2533_v23  ;;  %488 = vmatprep.mubr.f32.mxu0 %v2794_v1  ;;  %v311_v40 = vld [vmem:[#allocation2 + $0x48] sm:$0xff]  ;;  %v310_v43 = vld [vmem:[#allocation2 + $0x40] sm:$0xff]  ;;  %v341_v45 = vld [vmem:[#allocation2 + $0x138] sm:$0xff]  ;;  %s2400_s20 = sshll.u32 %s176_s19, 4  ;;  %s3053_s26 = scalar_lea.hbm %s3098_s3, %s2508_s17  ;;  %s3055_s20 = int_to_ptr.vmem [resolvable:$true] %s2400_s20 }
  0x3e   : > { %428 = vmatprep.subr.mxu0 %v337_v26  ;;  %358 = vmatpush1.msra.mxu1 %v334_v27  ;;  %v327_v41 = vld [vmem:[#allocation2 + $0xc8] sm:$0xff]  ;;  %v326_v44 = vld [vmem:[#allocation2 + $0xc0] sm:$0xff]  ;;  %v313_v48 = vld [vmem:[#allocation2 + $0x58] sm:$0xff]  ;;  %s2387_s27 = scalar_lea.sflag [#allocation4], %s174_s10  ;;  %s2721_s28 = scalar_lea.vmem %s3055_s20, 128 }
  0x3f   : > { %v2925_v33 = vsel %vm298_vm2, 1.0, %v297_v19  ;;  %2536 = vmatprep.subr.bf16.mxu1 %v2535_v29  ;;  %v338_v46 = vld [vmem:[#allocation2 + $0x120] sm:$0xff]  ;;  %v2543_v47 = vpack.c.bf16 %v327_v41, %v311_v40  ;;  %v329_v49 = vld [vmem:[#allocation2 + $0xd8] sm:$0xff]  ;;  %v2545_v50 = vpack.c.bf16 %v326_v44, %v310_v43  ;;  %v312_v51 = vld [vmem:[#allocation2 + $0x50] sm:$0xff]  ;;  %p2722_p6 = scmp.ne.s32.totalorder %s3055_s20, %s2721_s28  ;;  %p3109_p9 = scmp.ne.s32.totalorder %s3102_s22, 0 }
  0x40   : > { %2480 = vmatmul.mubr.msk.f32.vlgmr.msra.gmra.mrb[0].mxu1 %vm185_vm1, %v2925_v33  ;;  %v328_v52 = vld [vmem:[#allocation2 + $0xd0] sm:$0xff]  ;;  %v2547_v54 = vpack.c.bf16 %v329_v49, %v313_v48  ;;  %v343_v55 = vld [vmem:[#allocation2 + $0x148] sm:$0xff]  ;;  %v314_v59 = vld [vmem:[#allocation2 + $0x60] sm:$0xff]  ;;  %s2800_s16 = smov [#allocation5]  }
  0x41   : > { %2538 = vmatpush1.bf16.msra.mxu1 %v2537_v34  ;;  %559 = vmatprep.mubr.f32.mxu1 %v2794_v1  ;;  %v340_v53 = vld [vmem:[#allocation2 + $0x130] sm:$0xff]  ;;  %v315_v56 = vld [vmem:[#allocation2 + $0x68] sm:$0xff]  ;;  %v2549_v58 = vpack.c.bf16 %v328_v52, %v312_v51  ;;  %v330_v60 = vld [vmem:[#allocation2 + $0xe0] sm:$0xff]  ;;  %p2723_p10 = pnand %p2722_p6, %p3109_p9  ;;  %s2725_s29 = sshll.u32 %s2800_s16, 4  ;;  %s2726_s29 = int_to_ptr.vmem [resolvable:$false] %s2725_s29 }
  0x42   : > { %429 = vmatpush1.msra.mxu0 %v336_v37  ;;  %499 = vmatprep.subr.mxu1 %v339_v39  ;;  %v331_v57 = vld [vmem:[#allocation2 + $0xe8] sm:$0xff]  ;;  %v345_v61 = vld [vmem:[#allocation2 + $0x158] sm:$0xff]  ;;  %v342_v62 = vld [vmem:[#allocation2 + $0x140] sm:$0xff]  ;;  %v2553_v3 = vpack.c.bf16 %v330_v60, %v314_v59  ;;  %s2727_s30 = scalar_lea.vmem %s2726_s29, 256  ;;  %p2728_p2 = scmp.lt.s32.totalorder %s3055_s20, %s2726_s29 }
  0x43   : > { %2540 = vmatprep.subr.bf16.mxu0 %v2539_v38  ;;  %2481 = vmatmul.mubr.msk.f32.vlgmr.msra.gmra.mrb[2].mxu0 %vm185_vm1, %v2925_v33  ;;  %v2551_v63 = vpack.c.bf16 %v331_v57, %v315_v56  ;;  %v317_v0 = vld [vmem:[#allocation2 + $0x78] sm:$0xff]  ;;  %v316_v4 = vld [vmem:[#allocation2 + $0x70] sm:$0xff]  ;;  %v347_v9 = vld [vmem:[#allocation2 + $0x168] sm:$0xff]  ;;  %p2724_p12 = pneg %p2723_p10  ;;  %p2729_p3 = scmp.lt.s32.totalorder %s2727_s30, %s2721_s28 }
  0x44   : > { %2542 = vmatpush1.bf16.msra.mxu0 %v2541_v42  ;;  %630 = vmatprep.mubr.f32.mxu0 %v2794_v1  ;;  %v333_v2 = vld [vmem:[#allocation2 + $0xf8] sm:$0xff]  ;;  %v332_v5 = vld [vmem:[#allocation2 + $0xf0] sm:$0xff]  ;;  %v346_v12 = vld [vmem:[#allocation2 + $0x160] sm:$0xff] }
  0x45   : > { %570 = vmatprep.subr.mxu0 %v341_v45  ;;  %500 = vmatpush1.msra.mxu1 %v338_v46  ;;  %v344_v6 = vld [vmem:[#allocation2 + $0x150] sm:$0xff]  ;;  %v2555_v8 = vpack.c.bf16 %v333_v2, %v317_v0  ;;  %v2557_v10 = vpack.c.bf16 %v332_v5, %v316_v4  ;;  %v349_v11 = vld [vmem:[#allocation2 + $0x178] sm:$0xff]  ;;  %v1008_v38 = vld [vmem:[#allocation2 + $0x188] sm:$0xff]  ;;  %p2730_p4 = por %p2729_p3, %p2728_p2 }
  0x46   : > { %2544 = vmatprep.subr.bf16.mxu1 %v2543_v47  ;;  %2482 = vmatmul.mubr.msk.f32.vlgmr.msra.gmra.mrb[2].mxu1 %vm185_vm1, %v2925_v33  ;;  %v348_v13 = vld [vmem:[#allocation2 + $0x170] sm:$0xff]  ;;  %v1024_v39 = vld [vmem:[#allocation2 + $0x208] sm:$0xff]  ;;  %v1007_v43 = vld [vmem:[#allocation2 + $0x180] sm:$0xff] }
  0x47   : > { %2546 = vmatpush1.bf16.msra.mxu1 %v2545_v50  ;;  %701 = vmatprep.mubr.f32.mxu1 %v2794_v1  ;;  %v1012_v40 = vld [vmem:[#allocation2 + $0x1a8] sm:$0xff]  ;;  %v2559_v41 = vpack.c.bf16 %v1024_v39, %v1008_v38  ;;  %v1023_v44 = vld [vmem:[#allocation2 + $0x200] sm:$0xff]  ;;  %v1010_v49 = vld [vmem:[#allocation2 + $0x198] sm:$0xff]  ;;  %p2731_p7 = pnand %p2730_p4, %p2724_p12 }
  0x48   : > { %571 = vmatpush1.msra.mxu0 %v340_v53  ;;  %641 = vmatprep.subr.mxu1 %v343_v55  ;;  %v1028_v42 = vld [vmem:[#allocation2 + $0x228] sm:$0xff]  ;;  %v2561_v46 = vpack.c.bf16 %v1023_v44, %v1007_v43  ;;  %v1011_v47 = vld [vmem:[#allocation2 + $0x1a0] sm:$0xff]  ;;  %v1026_v51 = vld [vmem:[#allocation2 + $0x218] sm:$0xff] }
  0x49   : > { %2548 = vmatprep.subr.bf16.mxu0 %v2547_v54  ;;  %2483 = vmatmul.mubr.msk.f32.vlgmr.msra.gmra.mrb[4].mxu0 %vm185_vm1, %v2925_v33  ;;  %v2567_v45 = vpack.c.bf16 %v1028_v42, %v1012_v40  ;;  %v1027_v48 = vld [vmem:[#allocation2 + $0x220] sm:$0xff]  ;;  %v1016_v52 = vld [vmem:[#allocation2 + $0x1c8] sm:$0xff]  ;;  %v2563_v54 = vpack.c.bf16 %v1026_v51, %v1010_v49  ;;  %v1014_v40 = vld [vmem:[#allocation2 + $0x1b8] sm:$0xff] }
  0x4a   : > { %2550 = vmatpush1.bf16.msra.mxu0 %v2549_v58  ;;  %772 = vmatprep.mubr.f32.mxu0 %v2794_v1  ;;  %v2569_v50 = vpack.c.bf16 %v1027_v48, %v1011_v47  ;;  %v1032_v53 = vld [vmem:[#allocation2 + $0x248] sm:$0xff]  ;;  %v1015_v38 = vld [vmem:[#allocation2 + $0x1c0] sm:$0xff]  ;;  %v1034_v51 = vld [vmem:[#allocation2 + $0x258] sm:$0xff] }
  0x4b   : > { %712 = vmatprep.subr.mxu0 %v345_v61  ;;  %642 = vmatpush1.msra.mxu1 %v342_v62  ;;  %v2575_v55 = vpack.c.bf16 %v1032_v53, %v1016_v52  ;;  %v1031_v39 = vld [vmem:[#allocation2 + $0x240] sm:$0xff]  ;;  %v1036_v42 = vld [vmem:[#allocation2 + $0x268] sm:$0xff] }
  0x4c   : > { %2552 = vmatprep.subr.bf16.mxu1 %v2551_v63  ;;  %2484 = vmatmul.mubr.msk.f32.vlgmr.msra.gmra.mrb[4].mxu1 %vm185_vm1, %v2925_v33  ;;  %v2577_v44 = vpack.c.bf16 %v1031_v39, %v1015_v38  ;;  %v1035_v47 = vld [vmem:[#allocation2 + $0x260] sm:$0xff] }
  0x4d   : > { %2554 = vmatpush1.bf16.msra.mxu1 %v2553_v3  ;;  %843 = vmatprep.mubr.f32.mxu1 %v2794_v1 }
  0x4e   : > { %713 = vmatpush1.msra.mxu0 %v344_v6  ;;  %783 = vmatprep.subr.mxu1 %v347_v9 }
  0x4f   : > { %2556 = vmatprep.subr.bf16.mxu0 %v2555_v8  ;;  %2485 = vmatmul.mubr.msk.f32.vlgmr.msra.gmra.mrb[6].mxu0 %vm185_vm1, %v2925_v33 }
  0x50   : > { %2558 = vmatpush1.bf16.msra.mxu0 %v2557_v10  ;;  %914 = vmatprep.mubr.f32.mxu0 %v2794_v1 }
  0x51   : > { %854 = vmatprep.subr.mxu0 %v349_v11  ;;  %784 = vmatpush1.msra.mxu1 %v346_v12 }
  0x52   : > { %2486 = vmatmul.mubr.msk.f32.vlgmr.msra.gmra.mrb[6].mxu1 %vm185_vm1, %v2925_v33  ;;  %2560 = vmatprep.subr.bf16.mxu1 %v2559_v41  ;;  %v1020_v41 = vld [vmem:[#allocation2 + $0x1e8] sm:$0xff] }
  0x53   : > { %1107 = vmatprep.mubr.f32.mxu1 %v2794_v1  ;;  %2562 = vmatpush1.bf16.msra.mxu1 %v2561_v46  ;;  %v1019_v46 = vld [vmem:[#allocation2 + $0x1e0] sm:$0xff]  ;;  %v2583_v49 = vpack.c.bf16 %v1036_v42, %v1020_v41 }
  0x54   : > { %855 = vmatpush1.msra.mxu0 %v348_v13  ;;  %2564 = vmatprep.subr.bf16.mxu1 %v2563_v54  ;;  %v2585_v53 = vpack.c.bf16 %v1035_v47, %v1019_v46  ;;  %v1017_v54 = vld [vmem:[#allocation2 + $0x1d0] sm:$0xff] }
  0x55   : > { %2487 = vmatmul.mubr.msk.f32.vlgmr.msra.gmra.mrb[8].mxu0 %vm185_vm1, %v2925_v33  ;;  %2568 = vmatprep.subr.bf16.mxu0 %v2567_v45  ;;  %v1013_v45 = vld [vmem:[#allocation2 + $0x1b0] sm:$0xff] }
  0x56   : > { %1249 = vmatprep.mubr.f32.mxu0 %v2794_v1  ;;  %2570 = vmatpush1.bf16.msra.mxu0 %v2569_v50  ;;  %v1018_v50 = vld [vmem:[#allocation2 + $0x1d8] sm:$0xff] }
  0x57   : > { %2576 = vmatprep.subr.bf16.mxu0 %v2575_v55  ;;  %v1033_v55 = vld [vmem:[#allocation2 + $0x250] sm:$0xff] }
 0x10f   : > { %v2953_v18 = vpop.f32.mrb[0].mxu0 }
 0x110   : > { %vm264_vm4 = vcmp.gt.f32.partialorder %v2953_v18, 0.0  ;;  %v2523_v19 = vpop.f32.mrb[1].mxu0 }
 0x111   : > { %v265_v20 = vsel %vm264_vm4, %v263_v17, 0.0 }
 0x112   : > { %v267_v21 = vsel %vm266_vm3, %v265_v20, 0.0 }
 0x113   : > { %v419_v22 = vpop.f32.mrb[0].mxu1  ;;  %268 = vadd.xlane.f32.xlu0 %v267_v21 }
 0x114   : > { %v421_v23 = vpop.f32.mrb[1].mxu1 }
 0x116   : > { %v490_v24 = vpop.f32.mrb[2].mxu0 }
 0x117   : > { %v492_v25 = vpop.f32.mrb[3].mxu0 }
 0x119   : > { %v561_v26 = vpop.f32.mrb[2].mxu1 }
 0x11a   : > { %v563_v28 = vpop.f32.mrb[3].mxu1 }
 0x11c   : > { %v2959_v27 = vpop.f32.mrb[4].mxu0 }
 0x11d   : > { %v2961_v29 = vpop.f32.mrb[5].mxu0 }
 0x11f   : > { %v2963_v30 = vpop.f32.mrb[4].mxu1 }
 0x120   : > { %v2967_v32 = vpop.f32.mrb[5].mxu1 }
 0x122   : > { %v2965_v31 = vpop.f32.mrb[6].mxu0 }
 0x123   : > { %v2969_v33 = vpop.f32.mrb[7].mxu0 }
 0x125   : > { %v2971_v34 = vpop.f32.mrb[6].mxu1 }
 0x126   : > { %v2975_v36 = vpop.f32.mrb[7].mxu1 }
 0x128   : > { %v2973_v35 = vpop.f32.mrb[8].mxu0 }
 0x129   : > { %272 = vrot.lane.b32.xlu0 %v263_v17, %s2796_s6  ;;  %v2977_v37 = vpop.f32.mrb[9].mxu0 }
 0x12d   : > { %284 = vrot.lane.b32.xlu0 %v263_v17, %s2797_s7 }
 0x1a0   : > { %v269_v56 = vpop.xlane.xlu0 %268 }
 0x1a1   : > { %v2623_v57 = vtrunc.f32 %v269_v56  ;;  %v2579_v56 = vpack.c.bf16 %v1034_v51, %v1018_v50 }
 0x1a3   : > { %v2624_v58 = vcvt.f32.s32 %v2623_v57  ;;  %v1022_v57 = vld [vmem:[#allocation2 + $0x1f8] sm:$0xff] }
 0x1a4   : > { %v273_v59 = vpop.permute.xlu0 %272 }
 0x1a5   : > { %vm921_vm5 = vcmp.eq.s32.totalorder %v2624_v58, 0  ;;  %vm926_vm6 = vcmp.eq.s32.totalorder %v2624_v58, 1  ;;  %vm931_vm7 = vcmp.eq.s32.totalorder %v2624_v58, 2  ;;  %vm936_vm8 = vcmp.eq.s32.totalorder %v2624_v58, 3 }
 0x1a6   : > { %v924_v60 = vsel %vm921_vm5, %v419_v22, 0.0  ;;  %v929_v61 = vsel %vm926_vm6, %v421_v23, 0.0  ;;  %v934_v63 = vsel %vm931_vm7, %v490_v24, 0.0  ;;  %vm941_vm9 = vcmp.eq.s32.totalorder %v2624_v58, 4 }
 0x1a7   : > { %v930_v62 = vadd.f32 %v929_v61, %v924_v60  ;;  %v939_v2 = vsel %vm936_vm8, %v492_v25, 0.0  ;;  %vm946_vm10 = vcmp.eq.s32.totalorder %v2624_v58, 5  ;;  %v944_v5 = vsel %vm941_vm9, %v561_v26, 0.0  ;;  %v1021_v61 = vld [vmem:[#allocation2 + $0x1f0] sm:$0xff] }
 0x1a8   : > { %v285_v4 = vpop.permute.xlu0 %284  ;;  %vm951_vm11 = vcmp.eq.s32.totalorder %v2624_v58, 6  ;;  %v949_v8 = vsel %vm946_vm10, %v563_v28, 0.0  ;;  %v275_v9 = vsel %vm264_vm4, %v273_v59, 0.0  ;;  %vm956_vm12 = vcmp.eq.s32.totalorder %v2624_v58, 7 }
 0x1a9   : > { %v935_v0 = vadd.f32 %v934_v63, %v930_v62  ;;  %v287_v10 = vsel %vm264_vm4, %v285_v4, 0.0  ;;  %277 = vrot.lane.b32.xlu1 %v275_v9, %s2798_s8  ;;  %v954_v12 = vsel %vm951_vm11, %v2959_v27, 0.0  ;;  %vm961_vm13 = vcmp.eq.s32.totalorder %v2624_v58, 8  ;;  %v1037_v62 = vld [vmem:[#allocation2 + $0x270] sm:$0xff] }
 0x1aa   : > { %289 = vrot.lane.b32.xlu0 %v287_v10, %s2799_s9  ;;  %v959_v14 = vsel %vm956_vm12, %v2961_v29, 0.0  ;;  %vm966_vm14 = vcmp.eq.s32.totalorder %v2624_v58, 9  ;;  %v964_v16 = vsel %vm961_vm13, %v2963_v30, 0.0  ;;  %vm971_vm15 = vcmp.eq.s32.totalorder %v2624_v58, 10  ;;  %v1009_v30 = vld [vmem:[#allocation2 + $0x190] sm:$0xff]  ;;  %v1710_v10 = vld [vmem:[#allocation2 + $0x300] sm:$0xff] }
 0x1ab   : > { %v940_v3 = vadd.f32 %v939_v2, %v935_v0  ;;  %v969_v18 = vsel %vm966_vm14, %v2967_v32, 0.0  ;;  %vm976_vm0 = vcmp.eq.s32.totalorder %v2624_v58, 11  ;;  %v974_v20 = vsel %vm971_vm15, %v2965_v31, 0.0  ;;  %v1025_v32 = vld [vmem:[#allocation2 + $0x210] sm:$0xff] }
 0x1ac   : > { %vm981_vm1 = vcmp.eq.s32.totalorder %v2624_v58, 12  ;;  %v979_v22 = vsel %vm976_vm0, %v2969_v33, 0.0  ;;  %vm986_vm2 = vcmp.eq.s32.totalorder %v2624_v58, 13  ;;  %vm991_vm4 = vcmp.eq.s32.totalorder %v2624_v58, 14 }
 0x1ad   : > { %v945_v6 = vadd.f32 %v944_v5, %v940_v3  ;;  %v984_v24 = vsel %vm981_vm1, %v2971_v34, 0.0  ;;  %v989_v26 = vsel %vm986_vm2, %v2975_v36, 0.0  ;;  %vm996_vm5 = vcmp.eq.s32.totalorder %v2624_v58, 15  ;;  %v1030_v34 = vld [vmem:[#allocation2 + $0x238] sm:$0xff]  ;;  %v1695_v5 = vld [vmem:[#allocation2 + $0x288] sm:$0xff] }
 0x1ae   : > { %v994_v28 = vsel %vm991_vm4, %v2973_v35, 0.0  ;;  %v999_v31 = vsel %vm996_vm5, %v2977_v37, 0.0  ;;  %vm1003_vm6 = vcmp.eq.s32.totalorder %v2917_v7, 8  ;;  %vm1039_vm7 = vcmask 130048   ;;  %v1029_v35 = vld [vmem:[#allocation2 + $0x230] sm:$0xff]  ;;  %v1038_v58 = vld [vmem:[#allocation2 + $0x278] sm:$0xff] }
 0x1af   : > { %v950_v11 = vadd.f32 %v949_v8, %v945_v6  ;;  %v2565_v36 = vpack.c.bf16 %v1025_v32, %v1009_v30  ;;  %v2571_v48 = vpack.c.bf16 %v1030_v34, %v1014_v40  ;;  %v2573_v52 = vpack.c.bf16 %v1029_v35, %v1013_v45  ;;  %v1711_v6 = vld [vmem:[#allocation2 + $0x308] sm:$0xff]  ;;  %v1694_v8 = vld [vmem:[#allocation2 + $0x280] sm:$0xff] }
 0x1b0   : > { %v2581_v59 = vpack.c.bf16 %v1033_v55, %v1017_v54  ;;  %v2587_v60 = vpack.c.bf16 %v1038_v58, %v1022_v57  ;;  %v2589_v63 = vpack.c.bf16 %v1037_v62, %v1021_v61  ;;  %v2591_v9 = vpack.c.bf16 %v1711_v6, %v1695_v5  ;;  %v1722_v7 = vld [vmem:[#allocation2 + $0x360] sm:$0xff] }
 0x1b1   : > { %v955_v13 = vadd.f32 %v954_v12, %v950_v11  ;;  %v1697_v11 = vld [vmem:[#allocation2 + $0x298] sm:$0xff] }
 0x1b2   : > { %v1713_v12 = vld [vmem:[#allocation2 + $0x318] sm:$0xff] }
 0x1b3   : > { %v960_v15 = vadd.f32 %v959_v14, %v955_v13  ;;  %v2593_v13 = vpack.c.bf16 %v1710_v10, %v1694_v8  ;;  %v2595_v14 = vpack.c.bf16 %v1713_v12, %v1697_v11  ;;  %v1698_v10 = vld [vmem:[#allocation2 + $0x2a0] sm:$0xff] }
 0x1b4   : > { %v1714_v12 = vld [vmem:[#allocation2 + $0x320] sm:$0xff] }
 0x1b5   : > { %v965_v17 = vadd.f32 %v964_v16, %v960_v15  ;;  %v1696_v15 = vld [vmem:[#allocation2 + $0x290] sm:$0xff] }
 0x1b6   : > { %v1712_v16 = vld [vmem:[#allocation2 + $0x310] sm:$0xff] }
 0x1b7   : > { %v970_v19 = vadd.f32 %v969_v18, %v965_v17  ;;  %v1699_v17 = vld [vmem:[#allocation2 + $0x2a8] sm:$0xff]  ;;  %v2597_v18 = vpack.c.bf16 %v1712_v16, %v1696_v15 }
 0x1b8   : > { %v1703_v16 = vld [vmem:[#allocation2 + $0x2c8] sm:$0xff] }
 0x1b9   : > { %v975_v21 = vadd.f32 %v974_v20, %v970_v19  ;;  %v1715_v19 = vld [vmem:[#allocation2 + $0x328] sm:$0xff]  ;;  %v1701_v20 = vld [vmem:[#allocation2 + $0x2b8] sm:$0xff] }
 0x1bb   : > { %v980_v23 = vadd.f32 %v979_v22, %v975_v21  ;;  %v1717_v21 = vld [vmem:[#allocation2 + $0x338] sm:$0xff]  ;;  %v2599_v22 = vpack.c.bf16 %v1715_v19, %v1699_v17  ;;  %v1719_v17 = vld [vmem:[#allocation2 + $0x348] sm:$0xff] }
 0x1bc   : > { %v1721_v19 = vld [vmem:[#allocation2 + $0x358] sm:$0xff] }
 0x1bd   : > { %v985_v25 = vadd.f32 %v984_v24, %v980_v23  ;;  %v2603_v23 = vpack.c.bf16 %v1717_v21, %v1701_v20  ;;  %v2601_v21 = vpack.c.bf16 %v1714_v12, %v1698_v10 }
 0x1bf   : > { %v990_v27 = vadd.f32 %v989_v26, %v985_v25 }
 0x1c1   : > { %v995_v29 = vadd.f32 %v994_v28, %v990_v27 }
 0x1c3   : > { %v1000_v33 = vadd.f32 %v999_v31, %v995_v29 }
 0x1c5   : > { %v2488_v43 = vclamps-f32 %v1000_v33, 6.906755 }
 0x1c7   : > { %v1006_v37 = vsel %vm1003_vm6, 1.0, %v2488_v43 }
 0x1c8   : > { %2489 = vmatmul.mubr.msk.f32.vlgmr.msra.gmra.mrb[8].mxu1 %vm1039_vm7, %v1006_v37  ;;  %2491 = vmatmul.mubr.msk.f32.vlgmr.msra.gmra.mrb[10].mxu0 %vm1039_vm7, %v1006_v37 }
 0x1c9   : > { %2566 = vmatpush1.bf16.msra.mxu1 %v2565_v36  ;;  %2578 = vmatpush1.bf16.msra.mxu0 %v2577_v44 }
 0x1ca   : > { %1178 = vmatprep.mubr.f32.mxu1 %v2794_v1  ;;  %1391 = vmatprep.mubr.f32.mxu0 %v2794_v1 }
 0x1cb   : > { %2572 = vmatprep.subr.bf16.mxu1 %v2571_v48  ;;  %2584 = vmatprep.subr.bf16.mxu0 %v2583_v49 }
 0x1cc   : > { %2490 = vmatmul.mubr.msk.f32.vlgmr.msra.gmra.mrb[10].mxu1 %vm1039_vm7, %v1006_v37  ;;  %2493 = vmatmul.mubr.msk.f32.vlgmr.msra.gmra.mrb[12].mxu0 %vm1039_vm7, %v1006_v37 }
 0x1cd   : > { %2574 = vmatpush1.bf16.msra.mxu1 %v2573_v52  ;;  %2586 = vmatpush1.bf16.msra.mxu0 %v2585_v53 }
 0x1ce   : > { %1320 = vmatprep.mubr.f32.mxu1 %v2794_v1  ;;  %1533 = vmatprep.mubr.f32.mxu0 %v2794_v1 }
 0x1cf   : > { %2580 = vmatprep.subr.bf16.mxu1 %v2579_v56  ;;  %2592 = vmatprep.subr.bf16.mxu0 %v2591_v9 }
 0x1d0   : > { %2492 = vmatmul.mubr.msk.f32.vlgmr.msra.gmra.mrb[12].mxu1 %vm1039_vm7, %v1006_v37  ;;  %2495 = vmatmul.mubr.msk.f32.vlgmr.msra.gmra.mrb[14].mxu0 %vm1039_vm7, %v1006_v37 }
 0x1d1   : > { %2582 = vmatpush1.bf16.msra.mxu1 %v2581_v59  ;;  %1462 = vmatprep.mubr.f32.mxu1 %v2794_v1 }
 0x1d2   : > { %2588 = vmatprep.subr.bf16.mxu1 %v2587_v60  ;;  %1793 = vmatprep.mubr.f32.mxu0 %v2794_v1 }
 0x1d3   : > { %2594 = vmatpush1.bf16.msra.mxu0 %v2593_v13  ;;  %v1700_v13 = vld [vmem:[#allocation2 + $0x2b0] sm:$0xff] }
 0x1d4   : > { %2494 = vmatmul.mubr.msk.f32.vlgmr.msra.gmra.mrb[14].mxu1 %vm1039_vm7, %v1006_v37  ;;  %2600 = vmatprep.subr.bf16.mxu0 %v2599_v22 }
 0x1d5   : > { %2590 = vmatpush1.bf16.msra.mxu1 %v2589_v63  ;;  %1604 = vmatprep.mubr.f32.mxu1 %v2794_v1 }
 0x1d6   : > { %2596 = vmatprep.subr.bf16.mxu1 %v2595_v14  ;;  %v1716_v14 = vld [vmem:[#allocation2 + $0x330] sm:$0xff] }
 0x1d7   : > { %v2605_v22 = vpack.c.bf16 %v1716_v14, %v1700_v13 }
 0x1d8   : > { %2496 = vmatmul.mubr.msk.f32.vlgmr.msra.gmra.mrb[16].mxu1 %vm1039_vm7, %v1006_v37 }
 0x1d9   : > { %1864 = vmatprep.mubr.f32.mxu1 %v2794_v1  ;;  %2598 = vmatpush1.bf16.msra.mxu1 %v2597_v18  ;;  %v1705_v18 = vld [vmem:[#allocation2 + $0x2d8] sm:$0xff] }
 0x1da   : > { %2604 = vmatprep.subr.bf16.mxu1 %v2603_v23  ;;  %v1702_v23 = vld [vmem:[#allocation2 + $0x2c0] sm:$0xff] }
 0x21b   : > { %v278_v0 = vpop.permute.xlu1 %277 }
 0x21c   : > { %v290_v2 = vpop.permute.xlu0 %289  ;;  %v280_v3 = vsel %vm266_vm3, %v278_v0, 0.0 }
 0x21d   : > { %v292_v4 = vsel %vm266_vm3, %v290_v2, 0.0  ;;  %281 = vadd.xlane.f32.xlu1 %v280_v3 }
 0x21e   : > { %293 = vadd.xlane.f32.xlu0 %v292_v4 }
 0x29b   : > { %v1109_v24 = vpop.f32.mrb[8].mxu1  ;;  %v1251_v25 = vpop.f32.mrb[10].mxu0 }
 0x29c   : > { %v1111_v26 = vpop.f32.mrb[9].mxu1  ;;  %v1253_v27 = vpop.f32.mrb[11].mxu0 }
 0x29f   : > { %v1180_v28 = vpop.f32.mrb[10].mxu1  ;;  %v1393_v29 = vpop.f32.mrb[12].mxu0 }
 0x2a0   : > { %v1182_v30 = vpop.f32.mrb[11].mxu1  ;;  %v1395_v31 = vpop.f32.mrb[13].mxu0 }
 0x2a3   : > { %v1322_v32 = vpop.f32.mrb[12].mxu1  ;;  %v1535_v38 = vpop.f32.mrb[14].mxu0 }
 0x2a4   : > { %v1324_v39 = vpop.f32.mrb[13].mxu1  ;;  %v1537_v33 = vpop.f32.mrb[15].mxu0 }
 0x2a7   : > { %v1464_v40 = vpop.f32.mrb[14].mxu1 }
 0x2a8   : > { %v1466_v34 = vpop.f32.mrb[15].mxu1 }
 0x2aa   : > { %v282_v43 = vpop.xlane.xlu1 %281 }
 0x2ab   : > { %v1606_v41 = vpop.f32.mrb[16].mxu1  ;;  %v2625_v36 = vtrunc.f32 %v282_v43 }
 0x2ac   : > { %v1608_v42 = vpop.f32.mrb[17].mxu1 }
 0x2ad   : > { %v2626_v44 = vcvt.f32.s32 %v2625_v36 }
 0x2af   : > { %vm1611_vm3 = vcmp.eq.s32.totalorder %v2626_v44, 0  ;;  %vm1616_vm8 = vcmp.eq.s32.totalorder %v2626_v44, 1  ;;  %vm1621_vm9 = vcmp.eq.s32.totalorder %v2626_v44, 2  ;;  %vm1626_vm10 = vcmp.eq.s32.totalorder %v2626_v44, 3 }
 0x2b0   : > { %v1614_v45 = vsel %vm1611_vm3, %v1109_v24, 0.0  ;;  %v1619_v35 = vsel %vm1616_vm8, %v1111_v26, 0.0  ;;  %v1624_v47 = vsel %vm1621_vm9, %v1180_v28, 0.0  ;;  %vm1631_vm11 = vcmp.eq.s32.totalorder %v2626_v44, 4  ;;  %v1718_v24 = vld [vmem:[#allocation2 + $0x340] sm:$0xff]  ;;  %v1720_v26 = vld [vmem:[#allocation2 + $0x350] sm:$0xff] }
 0x2b1   : > { %v1620_v46 = vadd.f32 %v1619_v35, %v1614_v45  ;;  %v1629_v48 = vsel %vm1626_vm10, %v1182_v30, 0.0  ;;  %vm1636_vm12 = vcmp.eq.s32.totalorder %v2626_v44, 5  ;;  %v1634_v50 = vsel %vm1631_vm11, %v1251_v25, 0.0  ;;  %v1704_v25 = vld [vmem:[#allocation2 + $0x2d0] sm:$0xff]  ;;  %v1707_v30 = vld [vmem:[#allocation2 + $0x2e8] sm:$0xff]  ;;  %v294_v45 = vpop.xlane.xlu0 %293 }
 0x2b2   : > { %vm1641_vm13 = vcmp.eq.s32.totalorder %v2626_v44, 6  ;;  %v1639_v52 = vsel %vm1636_vm12, %v1253_v27, 0.0  ;;  %vm1646_vm14 = vcmp.eq.s32.totalorder %v2626_v44, 7  ;;  %vm1651_vm15 = vcmp.eq.s32.totalorder %v2626_v44, 8 }
 0x2b3   : > { %v1625_v37 = vadd.f32 %v1624_v47, %v1620_v46  ;;  %v1644_v54 = vsel %vm1641_vm13, %v1322_v32, 0.0  ;;  %v1649_v56 = vsel %vm1646_vm14, %v1324_v39, 0.0  ;;  %vm1656_vm0 = vcmp.eq.s32.totalorder %v2626_v44, 9  ;;  %v1709_v32 = vld [vmem:[#allocation2 + $0x2f8] sm:$0xff] }
 0x2b4   : > { %v1654_v58 = vsel %vm1651_vm15, %v1393_v29, 0.0  ;;  %vm1661_vm1 = vcmp.eq.s32.totalorder %v2626_v44, 10  ;;  %v1659_v60 = vsel %vm1656_vm0, %v1395_v31, 0.0  ;;  %vm1666_vm2 = vcmp.eq.s32.totalorder %v2626_v44, 11  ;;  %v1723_v31 = vld [vmem:[#allocation2 + $0x368] sm:$0xff] }
 0x2b5   : > { %v1630_v49 = vadd.f32 %v1629_v48, %v1625_v37  ;;  %v1664_v62 = vsel %vm1661_vm1, %v1464_v40, 0.0  ;;  %vm1671_vm4 = vcmp.eq.s32.totalorder %v2626_v44, 12  ;;  %v1669_v0 = vsel %vm1666_vm2, %v1466_v34, 0.0  ;;  %v1706_v40 = vld [vmem:[#allocation2 + $0x2e0] sm:$0xff]  ;;  %v1708_v34 = vld [vmem:[#allocation2 + $0x2f0] sm:$0xff] }
 0x2b6   : > { %vm1676_vm5 = vcmp.eq.s32.totalorder %v2626_v44, 13  ;;  %v1674_v3 = vsel %vm1671_vm4, %v1535_v38, 0.0  ;;  %vm1681_vm3 = vcmp.eq.s32.totalorder %v2626_v44, 14  ;;  %vm1686_vm8 = vcmp.eq.s32.totalorder %v2626_v44, 15  ;;  %v1725_v38 = vld [vmem:[#allocation2 + $0x378] sm:$0xff] }
 0x2b7   : > { %v1635_v51 = vadd.f32 %v1634_v50, %v1630_v49  ;;  %v1679_v5 = vsel %vm1676_vm5, %v1537_v33, 0.0  ;;  %v1684_v8 = vsel %vm1681_vm3, %v1606_v41, 0.0  ;;  %v1689_v11 = vsel %vm1686_vm8, %v1608_v42, 0.0  ;;  %v1724_v41 = vld [vmem:[#allocation2 + $0x370] sm:$0xff] }
 0x2b8   : > { %v2607_v28 = vpack.c.bf16 %v1719_v17, %v1703_v16  ;;  %v2611_v29 = vpack.c.bf16 %v1721_v19, %v1705_v18  ;;  %v2609_v39 = vpack.c.bf16 %v1718_v24, %v1702_v23  ;;  %v2613_v33 = vpack.c.bf16 %v1720_v26, %v1704_v25 }
 0x2b9   : > { %v1640_v53 = vadd.f32 %v1639_v52, %v1635_v51  ;;  %v2615_v42 = vpack.c.bf16 %v1723_v31, %v1707_v30  ;;  %v2619_v43 = vpack.c.bf16 %v1725_v38, %v1709_v32  ;;  %v2617_v36 = vpack.c.bf16 %v1722_v7, %v1706_v40 }
 0x2ba   : > { %v2621_v44 = vpack.c.bf16 %v1724_v41, %v1708_v34  ;;  %v2627_v35 = vtrunc.f32 %v294_v45 }
 0x2bb   : > { %v1645_v55 = vadd.f32 %v1644_v54, %v1640_v53 }
 0x2bc   : > { %v3030_v46 = vcvt.f32.s32 %v2627_v35 }
 0x2bd   : > { %v1650_v57 = vadd.f32 %v1649_v56, %v1645_v55 }
 0x2be   : > { %vm2302_vm9 = vcmp.eq.s32.totalorder %v3030_v46, 1  ;;  %vm2307_vm10 = vcmp.eq.s32.totalorder %v3030_v46, 2  ;;  %vm2317_vm11 = vcmp.eq.s32.totalorder %v3030_v46, 4  ;;  %vm2322_vm12 = vcmp.eq.s32.totalorder %v3030_v46, 5 }
 0x2bf   : > { %v1655_v59 = vadd.f32 %v1654_v58, %v1650_v57  ;;  %vm2327_vm13 = vcmp.eq.s32.totalorder %v3030_v46, 6  ;;  %vm2332_vm14 = vcmp.eq.s32.totalorder %v3030_v46, 7  ;;  %vm2337_vm15 = vcmp.eq.s32.totalorder %v3030_v46, 8 }
 0x2c0   : > { %vm2342_vm0 = vcmp.eq.s32.totalorder %v3030_v46, 9  ;;  %vm2347_vm1 = vcmp.eq.s32.totalorder %v3030_v46, 10  ;;  %vm2352_vm2 = vcmp.eq.s32.totalorder %v3030_v46, 11  ;;  %vm2357_vm4 = vcmp.eq.s32.totalorder %v3030_v46, 12 }
 0x2c1   : > { %v1660_v61 = vadd.f32 %v1659_v60, %v1655_v59  ;;  %vm2362_vm5 = vcmp.eq.s32.totalorder %v3030_v46, 13  ;;  %vm2367_vm3 = vcmp.eq.s32.totalorder %v3030_v46, 14  ;;  %vm2372_vm8 = vcmp.eq.s32.totalorder %v3030_v46, 15 }
 0x2c3   : > { %v1665_v63 = vadd.f32 %v1664_v62, %v1660_v61 }
 0x2c5   : > { %v1670_v2 = vadd.f32 %v1669_v0, %v1665_v63 }
 0x2c7   : > { %v1675_v4 = vadd.f32 %v1674_v3, %v1670_v2 }
 0x2c9   : > { %v1680_v6 = vadd.f32 %v1679_v5, %v1675_v4 }
 0x2cb   : > { %v1685_v9 = vadd.f32 %v1684_v8, %v1680_v6 }
 0x2cd   : > { %v1690_v15 = vadd.f32 %v1689_v11, %v1685_v9 }
 0x2cf   : > { %v2497_v20 = vclamps-f32 %v1690_v15, 6.906755 }
 0x2d1   : > { %v1693_v27 = vsel %vm1003_vm6, 1.0, %v2497_v20  ;;  %vm2297_vm6 = vcmp.eq.s32.totalorder %v3030_v46, 0 }
 0x2d2   : > { %2498 = vmatmul.mubr.msk.f32.vlgmr.msra.gmra.mrb[16].mxu0 %vm1039_vm7, %v1693_v27  ;;  %2499 = vmatmul.mubr.msk.f32.vlgmr.msra.gmra.mrb[18].mxu1 %vm1039_vm7, %v1693_v27 }
 0x2d3   : > { %2602 = vmatpush1.bf16.msra.mxu0 %v2601_v21  ;;  %2606 = vmatpush1.bf16.msra.mxu1 %v2605_v22 }
 0x2d4   : > { %1935 = vmatprep.mubr.f32.mxu0 %v2794_v1  ;;  %2006 = vmatprep.mubr.f32.mxu1 %v2794_v1 }
 0x2d5   : > { %2608 = vmatprep.subr.bf16.mxu0 %v2607_v28  ;;  %2612 = vmatprep.subr.bf16.mxu1 %v2611_v29 }
 0x2d6   : > { %2500 = vmatmul.mubr.msk.f32.vlgmr.msra.gmra.mrb[18].mxu0 %vm1039_vm7, %v1693_v27  ;;  %2501 = vmatmul.mubr.msk.f32.vlgmr.msra.gmra.mrb[20].mxu1 %vm1039_vm7, %v1693_v27 }
 0x2d7   : > { %2610 = vmatpush1.bf16.msra.mxu0 %v2609_v39  ;;  %2614 = vmatpush1.bf16.msra.mxu1 %v2613_v33 }
 0x2d8   : > { %2077 = vmatprep.mubr.f32.mxu0 %v2794_v1  ;;  %2148 = vmatprep.mubr.f32.mxu1 %v2794_v1 }
 0x2d9   : > { %2616 = vmatprep.subr.bf16.mxu0 %v2615_v42  ;;  %2620 = vmatprep.subr.bf16.mxu1 %v2619_v43 }
 0x2da   : > { %2502 = vmatmul.mubr.msk.f32.vlgmr.msra.gmra.mrb[20].mxu0 %vm1039_vm7, %v1693_v27  ;;  %2503 = vmatmul.mubr.msk.f32.vlgmr.msra.gmra.mrb[22].mxu1 %vm1039_vm7, %v1693_v27 }
 0x2db   : > { %2618 = vmatpush1.bf16.msra.mxu0 %v2617_v36  ;;  %2622 = vmatpush1.bf16.msra.mxu1 %v2621_v44 }
 0x2dc   : > { %2219 = vmatprep.mubr.f32.mxu0 %v2794_v1  ;;  %2290 = vmatprep.mubr.f32.mxu1 %v2794_v1 }
 0x2de   : > { %2504 = vmatmul.mubr.msk.f32.vlgmr.msra.gmra.mrb[22].mxu0 %vm1039_vm7, %v1693_v27  ;;  %2505 = vmatmul.mubr.msk.f32.vlgmr.msra.gmra.mrb[24].mxu1 %vm1039_vm7, %v1693_v27  ;;  %vm2312_vm7 = vcmp.eq.s32.totalorder %v3030_v46, 3 }
 0x3a5   : > { %v1795_v47 = vpop.f32.mrb[16].mxu0  ;;  %v1866_v37 = vpop.f32.mrb[18].mxu1 }
 0x3a6   : > { %v2300_v48 = vsel %vm2297_vm6, %v1795_v47, 0.0  ;;  %v1797_v49 = vpop.f32.mrb[17].mxu0  ;;  %v1868_v50 = vpop.f32.mrb[19].mxu1  ;;  %v2310_v52 = vsel %vm2307_vm10, %v1866_v37, 0.0 }
 0x3a7   : > { %v2305_v51 = vsel %vm2302_vm9, %v1797_v49, 0.0  ;;  %v2315_v58 = vsel %vm2312_vm7, %v1868_v50, 0.0 }
 0x3a8   : > { %v2306_v1 = vadd.f32 %v2305_v51, %v2300_v48 }
 0x3a9   : > { %v1937_v53 = vpop.f32.mrb[18].mxu0  ;;  %v2008_v54 = vpop.f32.mrb[20].mxu1 }
 0x3aa   : > { %v2311_v55 = vadd.f32 %v2310_v52, %v2306_v1  ;;  %v1939_v56 = vpop.f32.mrb[19].mxu0  ;;  %v2010_v57 = vpop.f32.mrb[21].mxu1  ;;  %v2320_v60 = vsel %vm2317_vm11, %v1937_v53, 0.0  ;;  %v2330_v5 = vsel %vm2327_vm13, %v2008_v54, 0.0 }
 0x3ab   : > { %v2325_v3 = vsel %vm2322_vm12, %v1939_v56, 0.0  ;;  %v2335_v12 = vsel %vm2332_vm14, %v2010_v57, 0.0 }
 0x3ac   : > { %v2316_v59 = vadd.f32 %v2315_v58, %v2311_v55 }
 0x3ad   : > { %v2079_v61 = vpop.f32.mrb[20].mxu0  ;;  %v2150_v62 = vpop.f32.mrb[22].mxu1 }
 0x3ae   : > { %v2321_v63 = vadd.f32 %v2320_v60, %v2316_v59  ;;  %v2081_v0 = vpop.f32.mrb[21].mxu0  ;;  %v2152_v2 = vpop.f32.mrb[23].mxu1  ;;  %v2340_v14 = vsel %vm2337_vm15, %v2079_v61, 0.0  ;;  %v2350_v18 = vsel %vm2347_vm1, %v2150_v62, 0.0 }
 0x3af   : > { %v2345_v16 = vsel %vm2342_vm0, %v2081_v0, 0.0  ;;  %v2355_v20 = vsel %vm2352_vm2, %v2152_v2, 0.0 }
 0x3b0   : > { %v2326_v4 = vadd.f32 %v2325_v3, %v2321_v63 }
 0x3b1   : > { %v2221_v6 = vpop.f32.mrb[22].mxu0  ;;  %v2292_v8 = vpop.f32.mrb[24].mxu1 }
 0x3b2   : > { %v2331_v9 = vadd.f32 %v2330_v5, %v2326_v4  ;;  %v2223_v10 = vpop.f32.mrb[23].mxu0  ;;  %v2294_v11 = vpop.f32.mrb[25].mxu1  ;;  %v2360_v22 = vsel %vm2357_vm4, %v2221_v6, 0.0  ;;  %v2370_v26 = vsel %vm2367_vm3, %v2292_v8, 0.0 }
 0x3b3   : > { %v2365_v24 = vsel %vm2362_vm5, %v2223_v10, 0.0  ;;  %v2375_v28 = vsel %vm2372_vm8, %v2294_v11, 0.0 }
 0x3b4   : > { %v2336_v13 = vadd.f32 %v2335_v12, %v2331_v9 }
 0x3b6   : > { %v2341_v15 = vadd.f32 %v2340_v14, %v2336_v13 }
 0x3b8   : > { %v2346_v17 = vadd.f32 %v2345_v16, %v2341_v15 }
 0x3ba   : > { %v2351_v19 = vadd.f32 %v2350_v18, %v2346_v17 }
 0x3bc   : > { %v2356_v21 = vadd.f32 %v2355_v20, %v2351_v19 }
 0x3be   : > { %v2361_v23 = vadd.f32 %v2360_v22, %v2356_v21 }
 0x3c0   : > { %v2366_v25 = vadd.f32 %v2365_v24, %v2361_v23 }
 0x3c2   : > { %v2371_v27 = vadd.f32 %v2370_v26, %v2366_v25 }
 0x3c4   : > { %v2376_v29 = vadd.f32 %v2375_v28, %v2371_v27 }
 0x3c6   : > { %v2506_v30 = vmul.f32 -1.442695, %v2376_v29 }
 0x3c8   : > { %2689 = vpow2.f32 %v2506_v30 }
 0x3d2   : > { %v2690_v31 = vpop.eup %2689 }
 0x3d3   : > { %v2380_v32 = vadd.f32 1.0, %v2690_v31 }
 0x3d5   : > { %2691 = vrcp.f32 %v2380_v32 }
 0x3df   : > { %v2692_v38 = vpop.eup %2691 }
 0x3e0   : > { %v2383_v39 = vmax.f32 %v2692_v38, 0.001 }
 0x3e2   : > { %v2384_v33 = vmin.f32 %v2383_v39, 0.999 }
 0x3e4   : > { %2385 = vst [vmem:[%s176_s19] sm:$0xff] %v2384_v33 }
 0x3e5   : > { %2734 = shalt.err (!%p2731_p7)
}
 0x3e6   : > { %s2735_s4 = scalar_lea.hbm %s3053_s26, 128  ;;  %s2739_s7 = scalar_lea.hbm %s3098_s3, 256 }
 0x3e7   : > { %p2736_p8 = scmp.ne.s32.totalorder %s3053_s26, %s2735_s4  ;;  %p2740_p1 = scmp.lt.u32.totalorder %s3053_s26, %s3098_s3 }
 0x3e8   : > { %p2741_p0 = scmp.lt.u32.totalorder %s2739_s7, %s2735_s4  ;;  %p2743_p6 = scmp.lt.u32.totalorder %s2735_s4, %s3053_s26 }
 0x3e9   : > { %p2737_p11 = pnand %p2736_p8, %p3109_p9 }
 0x3ea   : > { %p2742_p5 = por %p2741_p0, %p2740_p1 }
 0x3eb   : > { %p2738_p13 = pneg %p2737_p11 }
 0x3ec   : > { %p2744_p10 = por %p2743_p6, %p2742_p5 }
 0x3ee   : > { %p2745_p12 = pnand %p2744_p10, %p2738_p13 }
 0x3f0   : > { %2748 = shalt.err (!%p2745_p12)
}
 0x3f1   : > { %2633 = dma.vmem_to_hbm [thread:$0]  (%p3109_p9), %s3055_s20, 128, %s3053_s26, %s2387_s27  }
 0x3f2 PF: > { %p2645_p2 = scmp.ge.s32.totalorder %s2787_s15, 2  ;;  %s2412_s10 = sand.u32 1, %s2775_s12  }
 0x3f3   : > { %p3110_p3 = scmp.ne.s32.totalorder %s3103_s23, 0  ;;  %s2413_s11 = scalar_lea.sflag [#allocation4], %s2412_s10 }
 0x3f5   : > { %p2640_p4 = pnand %p2645_p2, %p3110_p3 }
 0x3f7   : > { %2770 = dma.done.wait (!%p2640_p4), %s2413_s11, 128  }
 0x3f8   : > { %2772 = vsyncadd (!%p2640_p4), %s2413_s11, 4294967168  ;;  %p14_p7 = scmp.ge.s32.totalorder %s2846_s18, 4   ;;  %s3111_s12 = smov %s2779_s13 }
 0x3f9   : > { %s3112_s13 = smov %s2783_s14  ;;  %s3113_s14 = smov %s2857_s21 }
 0x3fa   : > { %s3114_s15 = smov %s2846_s18  ;;  %16 = sbr.rel (!%p14_p7) target bundleno = 4 (0x4), region = 72 }
 0x401   :  { %2418 = vsyncpa [#allocation3], 1 }
 0x402   :  { %2420 = vsyncpa [#allocation3 + $0x1], 1 }
 0x403   :  { %2421 = vsyncpa [#allocation4], 1 }
 0x404   :  { %2423 = vsyncpa [#allocation4 + $0x1], 1 }

</bundles_post_ra>
